<compile_context>
chip_gen: v6e
topology: v6e:2x2x1
jax: 0.10.0
libtpu: 0.0.40
codegen_flags: <defaults>
</compile_context>

<pallas_src>
import functools
import math

import jax
import jax.numpy as jnp
from jax import lax
from jax.experimental import pallas as pl
from jax.experimental.pallas import tpu as pltpu


# ----------------------------------------------------------------------------
# Fused flash-style MHA kernel.
# Grid = (batch, q_tiles, kv_tiles); one step == one (q-tile, kv-tile) pair,
# all heads.  Online-softmax state persists in VMEM scratch across the KV axis.
# ----------------------------------------------------------------------------
def mha_flash_kernel(vl_ref, xq_ref, xk_ref, xv_ref,
                     wq_ref, wk_ref, wv_ref, wo_ref,
                     o_ref, q_scr, acc_scr, m_scr, l_scr,
                     *, num_heads, compute_dtype):
    b = pl.program_id(0)
    ki = pl.program_id(2)
    n_kv = pl.num_programs(2)

    _, tq, d = q_scr.shape
    tk = xk_ref.shape[1]
    scale = jnp.float32(1.0 / math.sqrt(d))

    # ---- init at the first KV tile: project Q once per (b, q-tile), reset
    #      the online-softmax state.  Scale folded into Q here (once).
    @pl.when(ki == 0)
    def _():
        xq = xq_ref[0].astype(compute_dtype)                       # (tq, Fq)
        q = jnp.dot(xq, wq_ref[...],
                    preferred_element_type=jnp.float32) * scale    # (tq, H)
        for h in range(num_heads):
            q_scr[h] = q[:, h * d:(h + 1) * d].astype(q_scr.dtype)
        m_scr[...] = jnp.full_like(m_scr, -jnp.inf)
        l_scr[...] = jnp.zeros_like(l_scr)
        acc_scr[...] = jnp.zeros_like(acc_scr)

    # ---- K/V projection for this KV tile: one full-width MXU matmul each.
    xk = xk_ref[0].astype(compute_dtype)                           # (tk, Fk)
    xv = xv_ref[0].astype(compute_dtype)                           # (tk, Fv)
    k = jnp.dot(xk, wk_ref[...], preferred_element_type=jnp.float32)  # (tk, H)
    v = jnp.dot(xv, wv_ref[...], preferred_element_type=jnp.float32)  # (tk, H)

    # Mask (d2l semantics): key positions >= valid_len get -1e6 before softmax.
    vl = vl_ref[b]                                                  # SMEM scalar
    col = ki * tk + lax.broadcasted_iota(jnp.int32, (tq, tk), 1)
    in_bounds = col < vl
    neg = jnp.float32(-1e6)

    # ---- online-softmax update per head (static slices of VALUES, aligned
    #      slab loads/stores of per-head SCRATCH).
    for h in range(num_heads):
        lo, hi = h * d, (h + 1) * d
        qh = q_scr[h]                                               # (tq, d)
        kh = k[:, lo:hi].astype(compute_dtype)                      # (tk, d)
        vh = v[:, lo:hi].astype(compute_dtype)                      # (tk, d)

        # scores: contract last dims directly (no kh.T / XLU transpose).
        s = lax.dot_general(qh, kh, (((1,), (1,)), ((), ())),
                            preferred_element_type=jnp.float32)     # (tq, tk)
        s = jnp.where(in_bounds, s, neg)

        m_prev = m_scr[h]                                           # (tq, 1)
        m_new = jnp.maximum(m_prev, jnp.max(s, axis=-1, keepdims=True))
        alpha = jnp.exp(m_prev - m_new)
        p = jnp.exp(s - m_new)                                      # (tq, tk)

        l_scr[h] = alpha * l_scr[h] + jnp.sum(p, axis=-1, keepdims=True)
        acc_scr[h] = alpha * acc_scr[h] + jnp.dot(
            p.astype(compute_dtype), vh, preferred_element_type=jnp.float32)
        m_scr[h] = m_new

    # ---- finalize at the last KV tile: normalize, concat heads, and run the
    #      output projection as ONE (tq,H)@(H,H) matmul.
    @pl.when(ki == n_kv - 1)
    def _():
        parts = []
        for h in range(num_heads):
            inv_l = pl.reciprocal(l_scr[h], approx=False)           # exact
            parts.append(acc_scr[h] * inv_l)                        # (tq, d)
        ctx = jnp.concatenate(parts, axis=-1)                       # (tq, H)
        out = jnp.dot(ctx.astype(compute_dtype), wo_ref[...],
                      preferred_element_type=jnp.float32)           # (tq, H)
        o_ref[0] = out.astype(o_ref.dtype)


# ----------------------------------------------------------------------------
# Wrapper
# ----------------------------------------------------------------------------
def prepare_mha_params(torch_style_params, compute_dtype=jnp.float32):
    """One-time prep of PyTorch nn.Linear weights:
    (out,in) -> (in,out) transpose AND cast to compute_dtype (so no per-step
    weight casts happen inside the kernel and bf16 halves resident VMEM)."""
    return {name: jnp.asarray(w).T.astype(compute_dtype)
            for name, w in torch_style_params.items()}


def _pick_tile(n, target):
    """Largest multiple-of-8 divisor of n that is <= target (sublane-aligned
    blocks); falls back to the full extent, which is always a legal block."""
    if n <= target:
        return n
    start = target - (target % 8)
    for t in range(start, 0, -8):
        if n % t == 0:
            return t
    return n


def multi_head_attention(params_c, queries, keys, values, valid_lens, num_heads,
                         compute_dtype=jnp.float32,
                         tq_max=256, tk_max=512,
                         vmem_limit_bytes=48 * 1024 * 1024):
    """params_c: dict of (in,out) weights from prepare_mha_params (already in
    compute_dtype).  queries: (B, Sq, Fq); keys/values: (B, Sk, Fk/Fv);
    valid_lens: (B,) int or None.  Returns (B, Sq, num_hiddens)."""
    b, sq, fq = queries.shape
    _, sk, fk = keys.shape
    fv = values.shape[2]
    hid = params_c["W_q"].shape[1]
    if hid % num_heads != 0:
        raise ValueError(f"num_hiddens={hid} not divisible by num_heads={num_heads}")
    d = hid // num_heads

    if valid_lens is None:
        vl = jnp.full((b,), sk, dtype=jnp.int32)
    else:
        valid_lens = jnp.asarray(valid_lens)
        if valid_lens.ndim != 1:
            # TODO(synk): per-query (batch, seq) valid_lens not supported.
            raise NotImplementedError("only (batch,) valid_lens supported")
        vl = valid_lens.astype(jnp.int32)

    tq = _pick_tile(sq, tq_max)
    tk = _pick_tile(sk, tk_max)
    n_q = sq // tq
    n_k = sk // tk

    kernel = functools.partial(
        mha_flash_kernel, num_heads=num_heads, compute_dtype=compute_dtype)

    grid_spec = pltpu.PrefetchScalarGridSpec(
        num_scalar_prefetch=1,
        grid=(b, n_q, n_k),
        in_specs=[
            pl.BlockSpec((1, tq, fq), lambda bi, qi, ki, vl_ref: (bi, qi, 0)),
            pl.BlockSpec((1, tk, fk), lambda bi, qi, ki, vl_ref: (bi, ki, 0)),
            pl.BlockSpec((1, tk, fv), lambda bi, qi, ki, vl_ref: (bi, ki, 0)),
            # Weights: constant block index -> stay resident in VMEM.
            pl.BlockSpec((fq, hid), lambda bi, qi, ki, vl_ref: (0, 0)),
            pl.BlockSpec((fk, hid), lambda bi, qi, ki, vl_ref: (0, 0)),
            pl.BlockSpec((fv, hid), lambda bi, qi, ki, vl_ref: (0, 0)),
            pl.BlockSpec((hid, hid), lambda bi, qi, ki, vl_ref: (0, 0)),
        ],
        # Same output block across the KV axis -> resident; written at last KV step.
        out_specs=pl.BlockSpec((1, tq, hid), lambda bi, qi, ki, vl_ref: (bi, qi, 0)),
        scratch_shapes=[
            pltpu.VMEM((num_heads, tq, d), compute_dtype),   # projected Q (per head)
            pltpu.VMEM((num_heads, tq, d), jnp.float32),     # acc (unnormalized ctx)
            pltpu.VMEM((num_heads, tq, 1), jnp.float32),     # running max m
            pltpu.VMEM((num_heads, tq, 1), jnp.float32),     # running denom l
        ],
    )

    itemsize = jnp.dtype(queries.dtype).itemsize
    w_bytes = sum(int(w.size) * jnp.dtype(w.dtype).itemsize
                  for w in (params_c["W_q"], params_c["W_k"],
                            params_c["W_v"], params_c["W_o"]))
    bytes_accessed = int(
        (queries.size + keys.size + values.size + b * sq * hid) * itemsize + w_bytes)
    flops = int(2 * b * (sq * fq * hid + sk * fk * hid + sk * fv * hid
                         + 2 * sq * sk * hid + sq * hid * hid))
    cost = pl.CostEstimate(flops=flops,
                           transcendentals=int(b * num_heads * sq * sk),
                           bytes_accessed=bytes_accessed)

    return pl.pallas_call(
        kernel,
        out_shape=jax.ShapeDtypeStruct((b, sq, hid), queries.dtype),
        grid_spec=grid_spec,
        compiler_params=pltpu.CompilerParams(
            # batch and Q-tile axes feed both v7x TensorCores; KV axis carries
            # the online-softmax reduction.
            dimension_semantics=("parallel", "parallel", "arbitrary"),
            vmem_limit_bytes=vmem_limit_bytes,   # <64 MiB (v7x), > scoped defaults
        ),
        cost_estimate=cost,
    )(vl, queries, keys, values,
      params_c["W_q"], params_c["W_k"], params_c["W_v"], params_c["W_o"])


# ----------------------------------------------------------------------------
# Pure-JAX reference (mirrors the PyTorch module) for verification
# ----------------------------------------------------------------------------
def reference_mha(raw_params, queries, keys, values, valid_lens, num_heads):
    def t_qkv(x):
        bb, ss, hh = x.shape
        x = x.reshape(bb, ss, num_heads, hh // num_heads)
        x = jnp.transpose(x, (0, 2, 1, 3))
        return x.reshape(bb * num_heads, ss, hh // num_heads)

    def t_out(x):
        bh, ss, dd = x.shape
        x = x.reshape(bh // num_heads, num_heads, ss, dd)
        x = jnp.transpose(x, (0, 2, 1, 3))
        return x.reshape(bh // num_heads, ss, num_heads * dd)

    q = t_qkv(queries @ raw_params["W_q"].T)
    k = t_qkv(keys @ raw_params["W_k"].T)
    v = t_qkv(values @ raw_params["W_v"].T)
    d = q.shape[-1]
    scores = jnp.einsum("bqd,bkd->bqk", q, k) / math.sqrt(d)
    if valid_lens is not None:
        vlr = jnp.repeat(valid_lens, num_heads, axis=0)
        colr = jnp.arange(k.shape[1])[None, None, :]
        scores = jnp.where(colr < vlr[:, None, None], scores, -1e6)
    p = jax.nn.softmax(scores, axis=-1)
    out = jnp.einsum("bqk,bkd->bqd", p, v)
    return t_out(out) @ raw_params["W_o"].T


# ----------------------------------------------------------------------------
if __name__ == "__main__":
    key_size = quary_size = value_size = 16
    num_hiddens = 32
    num_heads = 4
    batch, seq_q, seq_kv = 2, 8, 8

    root = jax.random.PRNGKey(0)
    kq, kk, kv, ko, kx1, kx2, kx3 = jax.random.split(root, 7)

    # PyTorch nn.Linear weights are (out_features, in_features), bias=False.
    raw_params = {
        "W_q": jax.random.normal(kq, (num_hiddens, quary_size), jnp.float32) * 0.1,
        "W_k": jax.random.normal(kk, (num_hiddens, key_size), jnp.float32) * 0.1,
        "W_v": jax.random.normal(kv, (num_hiddens, value_size), jnp.float32) * 0.1,
        "W_o": jax.random.normal(ko, (num_hiddens, num_hiddens), jnp.float32) * 0.1,
    }
    # One-time weight transpose + cast (f32 for the demo so it matches the f32
    # reference tightly; use jnp.bfloat16 at production sizes).
    params_c = prepare_mha_params(raw_params, compute_dtype=jnp.float32)

    queries = jax.random.normal(kx1, (batch, seq_q, quary_size), jnp.float32)
    keys = jax.random.normal(kx2, (batch, seq_kv, key_size), jnp.float32)
    values = jax.random.normal(kx3, (batch, seq_kv, value_size), jnp.float32)
    valid_lens = jnp.array([3, 6], dtype=jnp.int32)

    out = multi_head_attention(
        params_c, queries, keys, values, valid_lens, num_heads,
        compute_dtype=jnp.float32)
    out = jax.block_until_ready(out)

    ref = reference_mha(raw_params, queries, keys, values, valid_lens, num_heads)
    assert out.shape == (batch, seq_q, num_hiddens), out.shape
    max_err = float(jnp.max(jnp.abs(out - ref)))
    assert jnp.allclose(out, ref, atol=2e-3, rtol=2e-3), max_err
    print("KERNEL_OK")
</pallas_src>

<mosaic_0001>
module attributes {stable_mosaic.version = 11 : i64} {
  func.func @mha_flash_kernel(%arg0: i32, %arg1: i32, %arg2: i32, %arg3: memref<2xi32, #tpu.memory_space<smem>>, %arg4: memref<1x8x16xf32, #tpu.memory_space<vmem>>, %arg5: memref<1x8x16xf32, #tpu.memory_space<vmem>>, %arg6: memref<1x8x16xf32, #tpu.memory_space<vmem>>, %arg7: memref<16x32xf32, #tpu.memory_space<vmem>>, %arg8: memref<16x32xf32, #tpu.memory_space<vmem>>, %arg9: memref<16x32xf32, #tpu.memory_space<vmem>>, %arg10: memref<32x32xf32, #tpu.memory_space<vmem>>, %arg11: memref<1x8x32xf32, #tpu.memory_space<vmem>>, %arg12: memref<4x8x8xf32, #tpu.memory_space<vmem>>, %arg13: memref<4x8x8xf32, #tpu.memory_space<vmem>>, %arg14: memref<4x8x1xf32, #tpu.memory_space<vmem>>, %arg15: memref<4x8x1xf32, #tpu.memory_space<vmem>>) attributes {dimension_semantics = [#tpu.dimension_semantics<parallel>, #tpu.dimension_semantics<parallel>, #tpu.dimension_semantics<arbitrary>], iteration_bounds = array<i64: 2, 1, 1>, scalar_prefetch = 1 : i64, scratch_operands = 4 : i64, tpu.core_type = #tpu.core_type<tc>, window_params = [{transform_indices = @transform_0, window_bounds = array<i64: 1, 8, 16>}, {transform_indices = @transform_1, window_bounds = array<i64: 1, 8, 16>}, {transform_indices = @transform_2, window_bounds = array<i64: 1, 8, 16>}, {pipeline_mode = #tpu.pipeline_mode<synchronous>, transform_indices = @transform_3, window_bounds = array<i64: 16, 32>}, {pipeline_mode = #tpu.pipeline_mode<synchronous>, transform_indices = @transform_4, window_bounds = array<i64: 16, 32>}, {pipeline_mode = #tpu.pipeline_mode<synchronous>, transform_indices = @transform_5, window_bounds = array<i64: 16, 32>}, {pipeline_mode = #tpu.pipeline_mode<synchronous>, transform_indices = @transform_6, window_bounds = array<i64: 32, 32>}, {transform_indices = @transform_7, window_bounds = array<i64: 1, 8, 32>}]} {
    %c0_i32 = arith.constant 0 : i32
    %0 = arith.cmpi eq, %arg2, %c0_i32 : i32
    %1 = arith.extui %0 : i1 to i32
    %cst = arith.constant 0.353553385 : f32
    %c0_i32_0 = arith.constant 0 : i32
    %2 = arith.cmpi ne, %1, %c0_i32_0 : i32
    scf.if %2 {
      %c0_115 = arith.constant 0 : index
      %c0_116 = arith.constant 0 : index
      %c0_117 = arith.constant 0 : index
      %174 = vector.load %arg4[%c0_115, %c0_116, %c0_117] : memref<1x8x16xf32, #tpu.memory_space<vmem>>, vector<1x8x16xf32>
      %175 = vector.shape_cast %174 : vector<1x8x16xf32> to vector<8x16xf32>
      %c0_118 = arith.constant 0 : index
      %c0_119 = arith.constant 0 : index
      %176 = vector.load %arg7[%c0_118, %c0_119] : memref<16x32xf32, #tpu.memory_space<vmem>>, vector<16x32xf32>
      %cst_120 = arith.constant dense<0.000000e+00> : vector<8x32xf32>
      %177 = tpu.matmul %175, %176, %cst_120 {dimension_numbers = #tpu.dot_dimension_numbers<[1], [0], [0], [1], [0, 0, 1, 1], [], []>} : vector<8x16xf32>, vector<16x32xf32>, vector<8x32xf32> -> vector<8x32xf32>
      %178 = vector.broadcast %cst : f32 to vector<8x32xf32>
      %179 = arith.mulf %177, %178 : vector<8x32xf32>
      %180 = vector.extract_strided_slice %179 {offsets = [0, 0], sizes = [8, 8], strides = [1, 1]} : vector<8x32xf32> to vector<8x8xf32>
      %c0_121 = arith.constant 0 : index
      %c0_122 = arith.constant 0 : index
      %c0_123 = arith.constant 0 : index
      %181 = vector.load %arg12[%c0_121, %c0_122, %c0_123] : memref<4x8x8xf32, #tpu.memory_space<vmem>>, vector<1x8x8xf32>
      %182 = vector.shape_cast %181 : vector<1x8x8xf32> to vector<8x8xf32>
      %183 = vector.shape_cast %180 : vector<8x8xf32> to vector<1x8x8xf32>
      tpu.vector_store %arg12[%c0_121, %c0_122, %c0_123], %183 {strides = array<i32>} : memref<4x8x8xf32, #tpu.memory_space<vmem>>, vector<1x8x8xf32>,
      %184 = vector.extract_strided_slice %179 {offsets = [0, 8], sizes = [8, 8], strides = [1, 1]} : vector<8x32xf32> to vector<8x8xf32>
      %c1_124 = arith.constant 1 : index
      %c0_125 = arith.constant 0 : index
      %c0_126 = arith.constant 0 : index
      %185 = vector.load %arg12[%c1_124, %c0_125, %c0_126] : memref<4x8x8xf32, #tpu.memory_space<vmem>>, vector<1x8x8xf32>
      %186 = vector.shape_cast %185 : vector<1x8x8xf32> to vector<8x8xf32>
      %187 = vector.shape_cast %184 : vector<8x8xf32> to vector<1x8x8xf32>
      tpu.vector_store %arg12[%c1_124, %c0_125, %c0_126], %187 {strides = array<i32>} : memref<4x8x8xf32, #tpu.memory_space<vmem>>, vector<1x8x8xf32>,
      %188 = vector.extract_strided_slice %179 {offsets = [0, 16], sizes = [8, 8], strides = [1, 1]} : vector<8x32xf32> to vector<8x8xf32>
      %c2_127 = arith.constant 2 : index
      %c0_128 = arith.constant 0 : index
      %c0_129 = arith.constant 0 : index
      %189 = vector.load %arg12[%c2_127, %c0_128, %c0_129] : memref<4x8x8xf32, #tpu.memory_space<vmem>>, vector<1x8x8xf32>
      %190 = vector.shape_cast %189 : vector<1x8x8xf32> to vector<8x8xf32>
      %191 = vector.shape_cast %188 : vector<8x8xf32> to vector<1x8x8xf32>
      tpu.vector_store %arg12[%c2_127, %c0_128, %c0_129], %191 {strides = array<i32>} : memref<4x8x8xf32, #tpu.memory_space<vmem>>, vector<1x8x8xf32>,
      %192 = vector.extract_strided_slice %179 {offsets = [0, 24], sizes = [8, 8], strides = [1, 1]} : vector<8x32xf32> to vector<8x8xf32>
      %c3_130 = arith.constant 3 : index
      %c0_131 = arith.constant 0 : index
      %c0_132 = arith.constant 0 : index
      %193 = vector.load %arg12[%c3_130, %c0_131, %c0_132] : memref<4x8x8xf32, #tpu.memory_space<vmem>>, vector<1x8x8xf32>
      %194 = vector.shape_cast %193 : vector<1x8x8xf32> to vector<8x8xf32>
      %195 = vector.shape_cast %192 : vector<8x8xf32> to vector<1x8x8xf32>
      tpu.vector_store %arg12[%c3_130, %c0_131, %c0_132], %195 {strides = array<i32>} : memref<4x8x8xf32, #tpu.memory_space<vmem>>, vector<1x8x8xf32>,
      %cst_133 = arith.constant 0xFF800000 : f32
      %196 = vector.broadcast %cst_133 : f32 to vector<4x8x1xf32>
      %c0_134 = arith.constant 0 : index
      %c0_135 = arith.constant 0 : index
      %c0_136 = arith.constant 0 : index
      %197 = vector.load %arg14[%c0_134, %c0_135, %c0_136] : memref<4x8x1xf32, #tpu.memory_space<vmem>>, vector<4x8x1xf32>
      tpu.vector_store %arg14[%c0_134, %c0_135, %c0_136], %196 {strides = array<i32>} : memref<4x8x1xf32, #tpu.memory_space<vmem>>, vector<4x8x1xf32>,
      %cst_137 = arith.constant 0.000000e+00 : f32
      %198 = vector.broadcast %cst_137 : f32 to vector<4x8x1xf32>
      %c0_138 = arith.constant 0 : index
      %c0_139 = arith.constant 0 : index
      %c0_140 = arith.constant 0 : index
      %199 = vector.load %arg15[%c0_138, %c0_139, %c0_140] : memref<4x8x1xf32, #tpu.memory_space<vmem>>, vector<4x8x1xf32>
      tpu.vector_store %arg15[%c0_138, %c0_139, %c0_140], %198 {strides = array<i32>} : memref<4x8x1xf32, #tpu.memory_space<vmem>>, vector<4x8x1xf32>,
      %cst_141 = arith.constant 0.000000e+00 : f32
      %200 = vector.broadcast %cst_141 : f32 to vector<4x8x8xf32>
      %c0_142 = arith.constant 0 : index
      %c0_143 = arith.constant 0 : index
      %c0_144 = arith.constant 0 : index
      %201 = vector.load %arg13[%c0_142, %c0_143, %c0_144] : memref<4x8x8xf32, #tpu.memory_space<vmem>>, vector<4x8x8xf32>
      tpu.vector_store %arg13[%c0_142, %c0_143, %c0_144], %200 {strides = array<i32>} : memref<4x8x8xf32, #tpu.memory_space<vmem>>, vector<4x8x8xf32>,
    } else {
    }
    %c0 = arith.constant 0 : index
    %c0_1 = arith.constant 0 : index
    %c0_2 = arith.constant 0 : index
    %3 = vector.load %arg5[%c0, %c0_1, %c0_2] : memref<1x8x16xf32, #tpu.memory_space<vmem>>, vector<1x8x16xf32>
    %4 = vector.shape_cast %3 : vector<1x8x16xf32> to vector<8x16xf32>
    %c0_3 = arith.constant 0 : index
    %c0_4 = arith.constant 0 : index
    %c0_5 = arith.constant 0 : index
    %5 = vector.load %arg6[%c0_3, %c0_4, %c0_5] : memref<1x8x16xf32, #tpu.memory_space<vmem>>, vector<1x8x16xf32>
    %6 = vector.shape_cast %5 : vector<1x8x16xf32> to vector<8x16xf32>
    %c0_6 = arith.constant 0 : index
    %c0_7 = arith.constant 0 : index
    %7 = vector.load %arg8[%c0_6, %c0_7] : memref<16x32xf32, #tpu.memory_space<vmem>>, vector<16x32xf32>
    %cst_8 = arith.constant dense<0.000000e+00> : vector<8x32xf32>
    %8 = tpu.matmul %4, %7, %cst_8 {dimension_numbers = #tpu.dot_dimension_numbers<[1], [0], [0], [1], [0, 0, 1, 1], [], []>} : vector<8x16xf32>, vector<16x32xf32>, vector<8x32xf32> -> vector<8x32xf32>
    %c0_9 = arith.constant 0 : index
    %c0_10 = arith.constant 0 : index
    %9 = vector.load %arg9[%c0_9, %c0_10] : memref<16x32xf32, #tpu.memory_space<vmem>>, vector<16x32xf32>
    %cst_11 = arith.constant dense<0.000000e+00> : vector<8x32xf32>
    %10 = tpu.matmul %6, %9, %cst_11 {dimension_numbers = #tpu.dot_dimension_numbers<[1], [0], [0], [1], [0, 0, 1, 1], [], []>} : vector<8x16xf32>, vector<16x32xf32>, vector<8x32xf32> -> vector<8x32xf32>
    %11 = arith.index_cast %arg0 : i32 to index
    %12 = memref.load %arg3[%11] : memref<2xi32, #tpu.memory_space<smem>>
    %c8_i32 = arith.constant 8 : i32
    %13 = arith.muli %arg2, %c8_i32 : i32
    %14 = tpu.iota {dimensions = array<i32: 1>} : vector<8x8xi32>
    %15 = vector.broadcast %13 : i32 to vector<8x8xi32>
    %16 = arith.addi %15, %14 : vector<8x8xi32>
    %17 = vector.broadcast %12 : i32 to vector<8x8xi32>
    %18 = arith.cmpi slt, %16, %17 : vector<8x8xi32>
    %c0_12 = arith.constant 0 : index
    %c0_13 = arith.constant 0 : index
    %c0_14 = arith.constant 0 : index
    %19 = vector.load %arg12[%c0_12, %c0_13, %c0_14] : memref<4x8x8xf32, #tpu.memory_space<vmem>>, vector<1x8x8xf32>
    %20 = vector.shape_cast %19 : vector<1x8x8xf32> to vector<8x8xf32>
    %21 = vector.extract_strided_slice %8 {offsets = [0, 0], sizes = [8, 8], strides = [1, 1]} : vector<8x32xf32> to vector<8x8xf32>
    %22 = vector.extract_strided_slice %10 {offsets = [0, 0], sizes = [8, 8], strides = [1, 1]} : vector<8x32xf32> to vector<8x8xf32>
    %cst_15 = arith.constant dense<0.000000e+00> : vector<8x8xf32>
    %23 = tpu.matmul %20, %21, %cst_15 {dimension_numbers = #tpu.dot_dimension_numbers<[1], [1], [0], [0], [0, 0, 1, 0], [], []>} : vector<8x8xf32>, vector<8x8xf32>, vector<8x8xf32> -> vector<8x8xf32>
    %cst_16 = arith.constant -1.000000e+06 : f32
    %24 = vector.broadcast %cst_16 : f32 to vector<8x8xf32>
    %25 = arith.select %18, %23, %24 : vector<8x8xi1>, vector<8x8xf32>
    %c0_17 = arith.constant 0 : index
    %c0_18 = arith.constant 0 : index
    %c0_19 = arith.constant 0 : index
    %26 = vector.load %arg14[%c0_17, %c0_18, %c0_19] : memref<4x8x1xf32, #tpu.memory_space<vmem>>, vector<1x8x1xf32>
    %27 = vector.shape_cast %26 : vector<1x8x1xf32> to vector<8x1xf32>
    %cst_20 = arith.constant dense<0xFF800000> : vector<8xf32>
    %28 = vector.multi_reduction <maximumf>, %25, %cst_20 [1] : vector<8x8xf32> to vector<8xf32>
    %29 = vector.shape_cast %28 : vector<8xf32> to vector<8x1xf32>
    %30 = arith.maximumf %27, %29 : vector<8x1xf32>
    %31 = arith.subf %27, %30 : vector<8x1xf32>
    %32 = math.exp %31 : vector<8x1xf32>
    %33 = vector.broadcast %30 : vector<8x1xf32> to vector<8x8xf32>
    %34 = arith.subf %25, %33 : vector<8x8xf32>
    %35 = math.exp %34 : vector<8x8xf32>
    %c0_21 = arith.constant 0 : index
    %c0_22 = arith.constant 0 : index
    %c0_23 = arith.constant 0 : index
    %36 = vector.load %arg15[%c0_21, %c0_22, %c0_23] : memref<4x8x1xf32, #tpu.memory_space<vmem>>, vector<1x8x1xf32>
    %37 = vector.shape_cast %36 : vector<1x8x1xf32> to vector<8x1xf32>
    %38 = arith.mulf %32, %37 : vector<8x1xf32>
    %cst_24 = arith.constant dense<0.000000e+00> : vector<8xf32>
    %39 = vector.multi_reduction <add>, %35, %cst_24 [1] : vector<8x8xf32> to vector<8xf32>
    %40 = vector.shape_cast %39 : vector<8xf32> to vector<8x1xf32>
    %41 = arith.addf %38, %40 : vector<8x1xf32>
    %c0_25 = arith.constant 0 : index
    %c0_26 = arith.constant 0 : index
    %c0_27 = arith.constant 0 : index
    %42 = vector.load %arg15[%c0_25, %c0_26, %c0_27] : memref<4x8x1xf32, #tpu.memory_space<vmem>>, vector<1x8x1xf32>
    %43 = vector.shape_cast %42 : vector<1x8x1xf32> to vector<8x1xf32>
    %44 = vector.shape_cast %41 : vector<8x1xf32> to vector<1x8x1xf32>
    tpu.vector_store %arg15[%c0_25, %c0_26, %c0_27], %44 {strides = array<i32>} : memref<4x8x1xf32, #tpu.memory_space<vmem>>, vector<1x8x1xf32>,
    %c0_28 = arith.constant 0 : index
    %c0_29 = arith.constant 0 : index
    %c0_30 = arith.constant 0 : index
    %45 = vector.load %arg13[%c0_28, %c0_29, %c0_30] : memref<4x8x8xf32, #tpu.memory_space<vmem>>, vector<1x8x8xf32>
    %46 = vector.shape_cast %45 : vector<1x8x8xf32> to vector<8x8xf32>
    %47 = vector.broadcast %32 : vector<8x1xf32> to vector<8x8xf32>
    %48 = arith.mulf %47, %46 : vector<8x8xf32>
    %cst_31 = arith.constant dense<0.000000e+00> : vector<8x8xf32>
    %49 = tpu.matmul %35, %22, %cst_31 {dimension_numbers = #tpu.dot_dimension_numbers<[1], [0], [0], [1], [0, 0, 1, 1], [], []>} : vector<8x8xf32>, vector<8x8xf32>, vector<8x8xf32> -> vector<8x8xf32>
    %50 = arith.addf %48, %49 : vector<8x8xf32>
    %c0_32 = arith.constant 0 : index
    %c0_33 = arith.constant 0 : index
    %c0_34 = arith.constant 0 : index
    %51 = vector.load %arg13[%c0_32, %c0_33, %c0_34] : memref<4x8x8xf32, #tpu.memory_space<vmem>>, vector<1x8x8xf32>
    %52 = vector.shape_cast %51 : vector<1x8x8xf32> to vector<8x8xf32>
    %53 = vector.shape_cast %50 : vector<8x8xf32> to vector<1x8x8xf32>
    tpu.vector_store %arg13[%c0_32, %c0_33, %c0_34], %53 {strides = array<i32>} : memref<4x8x8xf32, #tpu.memory_space<vmem>>, vector<1x8x8xf32>,
    %c0_35 = arith.constant 0 : index
    %c0_36 = arith.constant 0 : index
    %c0_37 = arith.constant 0 : index
    %54 = vector.load %arg14[%c0_35, %c0_36, %c0_37] : memref<4x8x1xf32, #tpu.memory_space<vmem>>, vector<1x8x1xf32>
    %55 = vector.shape_cast %54 : vector<1x8x1xf32> to vector<8x1xf32>
    %56 = vector.shape_cast %30 : vector<8x1xf32> to vector<1x8x1xf32>
    tpu.vector_store %arg14[%c0_35, %c0_36, %c0_37], %56 {strides = array<i32>} : memref<4x8x1xf32, #tpu.memory_space<vmem>>, vector<1x8x1xf32>,
    %c1 = arith.constant 1 : index
    %c0_38 = arith.constant 0 : index
    %c0_39 = arith.constant 0 : index
    %57 = vector.load %arg12[%c1, %c0_38, %c0_39] : memref<4x8x8xf32, #tpu.memory_space<vmem>>, vector<1x8x8xf32>
    %58 = vector.shape_cast %57 : vector<1x8x8xf32> to vector<8x8xf32>
    %59 = vector.extract_strided_slice %8 {offsets = [0, 8], sizes = [8, 8], strides = [1, 1]} : vector<8x32xf32> to vector<8x8xf32>
    %60 = vector.extract_strided_slice %10 {offsets = [0, 8], sizes = [8, 8], strides = [1, 1]} : vector<8x32xf32> to vector<8x8xf32>
    %cst_40 = arith.constant dense<0.000000e+00> : vector<8x8xf32>
    %61 = tpu.matmul %58, %59, %cst_40 {dimension_numbers = #tpu.dot_dimension_numbers<[1], [1], [0], [0], [0, 0, 1, 0], [], []>} : vector<8x8xf32>, vector<8x8xf32>, vector<8x8xf32> -> vector<8x8xf32>
    %cst_41 = arith.constant -1.000000e+06 : f32
    %62 = vector.broadcast %cst_41 : f32 to vector<8x8xf32>
    %63 = arith.select %18, %61, %62 : vector<8x8xi1>, vector<8x8xf32>
    %c1_42 = arith.constant 1 : index
    %c0_43 = arith.constant 0 : index
    %c0_44 = arith.constant 0 : index
    %64 = vector.load %arg14[%c1_42, %c0_43, %c0_44] : memref<4x8x1xf32, #tpu.memory_space<vmem>>, vector<1x8x1xf32>
    %65 = vector.shape_cast %64 : vector<1x8x1xf32> to vector<8x1xf32>
    %cst_45 = arith.constant dense<0xFF800000> : vector<8xf32>
    %66 = vector.multi_reduction <maximumf>, %63, %cst_45 [1] : vector<8x8xf32> to vector<8xf32>
    %67 = vector.shape_cast %66 : vector<8xf32> to vector<8x1xf32>
    %68 = arith.maximumf %65, %67 : vector<8x1xf32>
    %69 = arith.subf %65, %68 : vector<8x1xf32>
    %70 = math.exp %69 : vector<8x1xf32>
    %71 = vector.broadcast %68 : vector<8x1xf32> to vector<8x8xf32>
    %72 = arith.subf %63, %71 : vector<8x8xf32>
    %73 = math.exp %72 : vector<8x8xf32>
    %c1_46 = arith.constant 1 : index
    %c0_47 = arith.constant 0 : index
    %c0_48 = arith.constant 0 : index
    %74 = vector.load %arg15[%c1_46, %c0_47, %c0_48] : memref<4x8x1xf32, #tpu.memory_space<vmem>>, vector<1x8x1xf32>
    %75 = vector.shape_cast %74 : vector<1x8x1xf32> to vector<8x1xf32>
    %76 = arith.mulf %70, %75 : vector<8x1xf32>
    %cst_49 = arith.constant dense<0.000000e+00> : vector<8xf32>
    %77 = vector.multi_reduction <add>, %73, %cst_49 [1] : vector<8x8xf32> to vector<8xf32>
    %78 = vector.shape_cast %77 : vector<8xf32> to vector<8x1xf32>
    %79 = arith.addf %76, %78 : vector<8x1xf32>
    %c1_50 = arith.constant 1 : index
    %c0_51 = arith.constant 0 : index
    %c0_52 = arith.constant 0 : index
    %80 = vector.load %arg15[%c1_50, %c0_51, %c0_52] : memref<4x8x1xf32, #tpu.memory_space<vmem>>, vector<1x8x1xf32>
    %81 = vector.shape_cast %80 : vector<1x8x1xf32> to vector<8x1xf32>
    %82 = vector.shape_cast %79 : vector<8x1xf32> to vector<1x8x1xf32>
    tpu.vector_store %arg15[%c1_50, %c0_51, %c0_52], %82 {strides = array<i32>} : memref<4x8x1xf32, #tpu.memory_space<vmem>>, vector<1x8x1xf32>,
    %c1_53 = arith.constant 1 : index
    %c0_54 = arith.constant 0 : index
    %c0_55 = arith.constant 0 : index
    %83 = vector.load %arg13[%c1_53, %c0_54, %c0_55] : memref<4x8x8xf32, #tpu.memory_space<vmem>>, vector<1x8x8xf32>
    %84 = vector.shape_cast %83 : vector<1x8x8xf32> to vector<8x8xf32>
    %85 = vector.broadcast %70 : vector<8x1xf32> to vector<8x8xf32>
    %86 = arith.mulf %85, %84 : vector<8x8xf32>
    %cst_56 = arith.constant dense<0.000000e+00> : vector<8x8xf32>
    %87 = tpu.matmul %73, %60, %cst_56 {dimension_numbers = #tpu.dot_dimension_numbers<[1], [0], [0], [1], [0, 0, 1, 1], [], []>} : vector<8x8xf32>, vector<8x8xf32>, vector<8x8xf32> -> vector<8x8xf32>
    %88 = arith.addf %86, %87 : vector<8x8xf32>
    %c1_57 = arith.constant 1 : index
    %c0_58 = arith.constant 0 : index
    %c0_59 = arith.constant 0 : index
    %89 = vector.load %arg13[%c1_57, %c0_58, %c0_59] : memref<4x8x8xf32, #tpu.memory_space<vmem>>, vector<1x8x8xf32>
    %90 = vector.shape_cast %89 : vector<1x8x8xf32> to vector<8x8xf32>
    %91 = vector.shape_cast %88 : vector<8x8xf32> to vector<1x8x8xf32>
    tpu.vector_store %arg13[%c1_57, %c0_58, %c0_59], %91 {strides = array<i32>} : memref<4x8x8xf32, #tpu.memory_space<vmem>>, vector<1x8x8xf32>,
    %c1_60 = arith.constant 1 : index
    %c0_61 = arith.constant 0 : index
    %c0_62 = arith.constant 0 : index
    %92 = vector.load %arg14[%c1_60, %c0_61, %c0_62] : memref<4x8x1xf32, #tpu.memory_space<vmem>>, vector<1x8x1xf32>
    %93 = vector.shape_cast %92 : vector<1x8x1xf32> to vector<8x1xf32>
    %94 = vector.shape_cast %68 : vector<8x1xf32> to vector<1x8x1xf32>
    tpu.vector_store %arg14[%c1_60, %c0_61, %c0_62], %94 {strides = array<i32>} : memref<4x8x1xf32, #tpu.memory_space<vmem>>, vector<1x8x1xf32>,
    %c2 = arith.constant 2 : index
    %c0_63 = arith.constant 0 : index
    %c0_64 = arith.constant 0 : index
    %95 = vector.load %arg12[%c2, %c0_63, %c0_64] : memref<4x8x8xf32, #tpu.memory_space<vmem>>, vector<1x8x8xf32>
    %96 = vector.shape_cast %95 : vector<1x8x8xf32> to vector<8x8xf32>
    %97 = vector.extract_strided_slice %8 {offsets = [0, 16], sizes = [8, 8], strides = [1, 1]} : vector<8x32xf32> to vector<8x8xf32>
    %98 = vector.extract_strided_slice %10 {offsets = [0, 16], sizes = [8, 8], strides = [1, 1]} : vector<8x32xf32> to vector<8x8xf32>
    %cst_65 = arith.constant dense<0.000000e+00> : vector<8x8xf32>
    %99 = tpu.matmul %96, %97, %cst_65 {dimension_numbers = #tpu.dot_dimension_numbers<[1], [1], [0], [0], [0, 0, 1, 0], [], []>} : vector<8x8xf32>, vector<8x8xf32>, vector<8x8xf32> -> vector<8x8xf32>
    %cst_66 = arith.constant -1.000000e+06 : f32
    %100 = vector.broadcast %cst_66 : f32 to vector<8x8xf32>
    %101 = arith.select %18, %99, %100 : vector<8x8xi1>, vector<8x8xf32>
    %c2_67 = arith.constant 2 : index
    %c0_68 = arith.constant 0 : index
    %c0_69 = arith.constant 0 : index
    %102 = vector.load %arg14[%c2_67, %c0_68, %c0_69] : memref<4x8x1xf32, #tpu.memory_space<vmem>>, vector<1x8x1xf32>
    %103 = vector.shape_cast %102 : vector<1x8x1xf32> to vector<8x1xf32>
    %cst_70 = arith.constant dense<0xFF800000> : vector<8xf32>
    %104 = vector.multi_reduction <maximumf>, %101, %cst_70 [1] : vector<8x8xf32> to vector<8xf32>
    %105 = vector.shape_cast %104 : vector<8xf32> to vector<8x1xf32>
    %106 = arith.maximumf %103, %105 : vector<8x1xf32>
    %107 = arith.subf %103, %106 : vector<8x1xf32>
    %108 = math.exp %107 : vector<8x1xf32>
    %109 = vector.broadcast %106 : vector<8x1xf32> to vector<8x8xf32>
    %110 = arith.subf %101, %109 : vector<8x8xf32>
    %111 = math.exp %110 : vector<8x8xf32>
    %c2_71 = arith.constant 2 : index
    %c0_72 = arith.constant 0 : index
    %c0_73 = arith.constant 0 : index
    %112 = vector.load %arg15[%c2_71, %c0_72, %c0_73] : memref<4x8x1xf32, #tpu.memory_space<vmem>>, vector<1x8x1xf32>
    %113 = vector.shape_cast %112 : vector<1x8x1xf32> to vector<8x1xf32>
    %114 = arith.mulf %108, %113 : vector<8x1xf32>
    %cst_74 = arith.constant dense<0.000000e+00> : vector<8xf32>
    %115 = vector.multi_reduction <add>, %111, %cst_74 [1] : vector<8x8xf32> to vector<8xf32>
    %116 = vector.shape_cast %115 : vector<8xf32> to vector<8x1xf32>
    %117 = arith.addf %114, %116 : vector<8x1xf32>
    %c2_75 = arith.constant 2 : index
    %c0_76 = arith.constant 0 : index
    %c0_77 = arith.constant 0 : index
    %118 = vector.load %arg15[%c2_75, %c0_76, %c0_77] : memref<4x8x1xf32, #tpu.memory_space<vmem>>, vector<1x8x1xf32>
    %119 = vector.shape_cast %118 : vector<1x8x1xf32> to vector<8x1xf32>
    %120 = vector.shape_cast %117 : vector<8x1xf32> to vector<1x8x1xf32>
    tpu.vector_store %arg15[%c2_75, %c0_76, %c0_77], %120 {strides = array<i32>} : memref<4x8x1xf32, #tpu.memory_space<vmem>>, vector<1x8x1xf32>,
    %c2_78 = arith.constant 2 : index
    %c0_79 = arith.constant 0 : index
    %c0_80 = arith.constant 0 : index
    %121 = vector.load %arg13[%c2_78, %c0_79, %c0_80] : memref<4x8x8xf32, #tpu.memory_space<vmem>>, vector<1x8x8xf32>
    %122 = vector.shape_cast %121 : vector<1x8x8xf32> to vector<8x8xf32>
    %123 = vector.broadcast %108 : vector<8x1xf32> to vector<8x8xf32>
    %124 = arith.mulf %123, %122 : vector<8x8xf32>
    %cst_81 = arith.constant dense<0.000000e+00> : vector<8x8xf32>
    %125 = tpu.matmul %111, %98, %cst_81 {dimension_numbers = #tpu.dot_dimension_numbers<[1], [0], [0], [1], [0, 0, 1, 1], [], []>} : vector<8x8xf32>, vector<8x8xf32>, vector<8x8xf32> -> vector<8x8xf32>
    %126 = arith.addf %124, %125 : vector<8x8xf32>
    %c2_82 = arith.constant 2 : index
    %c0_83 = arith.constant 0 : index
    %c0_84 = arith.constant 0 : index
    %127 = vector.load %arg13[%c2_82, %c0_83, %c0_84] : memref<4x8x8xf32, #tpu.memory_space<vmem>>, vector<1x8x8xf32>
    %128 = vector.shape_cast %127 : vector<1x8x8xf32> to vector<8x8xf32>
    %129 = vector.shape_cast %126 : vector<8x8xf32> to vector<1x8x8xf32>
    tpu.vector_store %arg13[%c2_82, %c0_83, %c0_84], %129 {strides = array<i32>} : memref<4x8x8xf32, #tpu.memory_space<vmem>>, vector<1x8x8xf32>,
    %c2_85 = arith.constant 2 : index
    %c0_86 = arith.constant 0 : index
    %c0_87 = arith.constant 0 : index
    %130 = vector.load %arg14[%c2_85, %c0_86, %c0_87] : memref<4x8x1xf32, #tpu.memory_space<vmem>>, vector<1x8x1xf32>
    %131 = vector.shape_cast %130 : vector<1x8x1xf32> to vector<8x1xf32>
    %132 = vector.shape_cast %106 : vector<8x1xf32> to vector<1x8x1xf32>
    tpu.vector_store %arg14[%c2_85, %c0_86, %c0_87], %132 {strides = array<i32>} : memref<4x8x1xf32, #tpu.memory_space<vmem>>, vector<1x8x1xf32>,
    %c3 = arith.constant 3 : index
    %c0_88 = arith.constant 0 : index
    %c0_89 = arith.constant 0 : index
    %133 = vector.load %arg12[%c3, %c0_88, %c0_89] : memref<4x8x8xf32, #tpu.memory_space<vmem>>, vector<1x8x8xf32>
    %134 = vector.shape_cast %133 : vector<1x8x8xf32> to vector<8x8xf32>
    %135 = vector.extract_strided_slice %8 {offsets = [0, 24], sizes = [8, 8], strides = [1, 1]} : vector<8x32xf32> to vector<8x8xf32>
    %136 = vector.extract_strided_slice %10 {offsets = [0, 24], sizes = [8, 8], strides = [1, 1]} : vector<8x32xf32> to vector<8x8xf32>
    %cst_90 = arith.constant dense<0.000000e+00> : vector<8x8xf32>
    %137 = tpu.matmul %134, %135, %cst_90 {dimension_numbers = #tpu.dot_dimension_numbers<[1], [1], [0], [0], [0, 0, 1, 0], [], []>} : vector<8x8xf32>, vector<8x8xf32>, vector<8x8xf32> -> vector<8x8xf32>
    %cst_91 = arith.constant -1.000000e+06 : f32
    %138 = vector.broadcast %cst_91 : f32 to vector<8x8xf32>
    %139 = arith.select %18, %137, %138 : vector<8x8xi1>, vector<8x8xf32>
    %c3_92 = arith.constant 3 : index
    %c0_93 = arith.constant 0 : index
    %c0_94 = arith.constant 0 : index
    %140 = vector.load %arg14[%c3_92, %c0_93, %c0_94] : memref<4x8x1xf32, #tpu.memory_space<vmem>>, vector<1x8x1xf32>
    %141 = vector.shape_cast %140 : vector<1x8x1xf32> to vector<8x1xf32>
    %cst_95 = arith.constant dense<0xFF800000> : vector<8xf32>
    %142 = vector.multi_reduction <maximumf>, %139, %cst_95 [1] : vector<8x8xf32> to vector<8xf32>
    %143 = vector.shape_cast %142 : vector<8xf32> to vector<8x1xf32>
    %144 = arith.maximumf %141, %143 : vector<8x1xf32>
    %145 = arith.subf %141, %144 : vector<8x1xf32>
    %146 = math.exp %145 : vector<8x1xf32>
    %147 = vector.broadcast %144 : vector<8x1xf32> to vector<8x8xf32>
    %148 = arith.subf %139, %147 : vector<8x8xf32>
    %149 = math.exp %148 : vector<8x8xf32>
    %c3_96 = arith.constant 3 : index
    %c0_97 = arith.constant 0 : index
    %c0_98 = arith.constant 0 : index
    %150 = vector.load %arg15[%c3_96, %c0_97, %c0_98] : memref<4x8x1xf32, #tpu.memory_space<vmem>>, vector<1x8x1xf32>
    %151 = vector.shape_cast %150 : vector<1x8x1xf32> to vector<8x1xf32>
    %152 = arith.mulf %146, %151 : vector<8x1xf32>
    %cst_99 = arith.constant dense<0.000000e+00> : vector<8xf32>
    %153 = vector.multi_reduction <add>, %149, %cst_99 [1] : vector<8x8xf32> to vector<8xf32>
    %154 = vector.shape_cast %153 : vector<8xf32> to vector<8x1xf32>
    %155 = arith.addf %152, %154 : vector<8x1xf32>
    %c3_100 = arith.constant 3 : index
    %c0_101 = arith.constant 0 : index
    %c0_102 = arith.constant 0 : index
    %156 = vector.load %arg15[%c3_100, %c0_101, %c0_102] : memref<4x8x1xf32, #tpu.memory_space<vmem>>, vector<1x8x1xf32>
    %157 = vector.shape_cast %156 : vector<1x8x1xf32> to vector<8x1xf32>
    %158 = vector.shape_cast %155 : vector<8x1xf32> to vector<1x8x1xf32>
    tpu.vector_store %arg15[%c3_100, %c0_101, %c0_102], %158 {strides = array<i32>} : memref<4x8x1xf32, #tpu.memory_space<vmem>>, vector<1x8x1xf32>,
    %c3_103 = arith.constant 3 : index
    %c0_104 = arith.constant 0 : index
    %c0_105 = arith.constant 0 : index
    %159 = vector.load %arg13[%c3_103, %c0_104, %c0_105] : memref<4x8x8xf32, #tpu.memory_space<vmem>>, vector<1x8x8xf32>
    %160 = vector.shape_cast %159 : vector<1x8x8xf32> to vector<8x8xf32>
    %161 = vector.broadcast %146 : vector<8x1xf32> to vector<8x8xf32>
    %162 = arith.mulf %161, %160 : vector<8x8xf32>
    %cst_106 = arith.constant dense<0.000000e+00> : vector<8x8xf32>
    %163 = tpu.matmul %149, %136, %cst_106 {dimension_numbers = #tpu.dot_dimension_numbers<[1], [0], [0], [1], [0, 0, 1, 1], [], []>} : vector<8x8xf32>, vector<8x8xf32>, vector<8x8xf32> -> vector<8x8xf32>
    %164 = arith.addf %162, %163 : vector<8x8xf32>
    %c3_107 = arith.constant 3 : index
    %c0_108 = arith.constant 0 : index
    %c0_109 = arith.constant 0 : index
    %165 = vector.load %arg13[%c3_107, %c0_108, %c0_109] : memref<4x8x8xf32, #tpu.memory_space<vmem>>, vector<1x8x8xf32>
    %166 = vector.shape_cast %165 : vector<1x8x8xf32> to vector<8x8xf32>
    %167 = vector.shape_cast %164 : vector<8x8xf32> to vector<1x8x8xf32>
    tpu.vector_store %arg13[%c3_107, %c0_108, %c0_109], %167 {strides = array<i32>} : memref<4x8x8xf32, #tpu.memory_space<vmem>>, vector<1x8x8xf32>,
    %c3_110 = arith.constant 3 : index
    %c0_111 = arith.constant 0 : index
    %c0_112 = arith.constant 0 : index
    %168 = vector.load %arg14[%c3_110, %c0_111, %c0_112] : memref<4x8x1xf32, #tpu.memory_space<vmem>>, vector<1x8x1xf32>
    %169 = vector.shape_cast %168 : vector<1x8x1xf32> to vector<8x1xf32>
    %170 = vector.shape_cast %144 : vector<8x1xf32> to vector<1x8x1xf32>
    tpu.vector_store %arg14[%c3_110, %c0_111, %c0_112], %170 {strides = array<i32>} : memref<4x8x1xf32, #tpu.memory_space<vmem>>, vector<1x8x1xf32>,
    %c0_i32_113 = arith.constant 0 : i32
    %171 = arith.cmpi eq, %arg2, %c0_i32_113 : i32
    %172 = arith.extui %171 : i1 to i32
    %c0_i32_114 = arith.constant 0 : i32
    %173 = arith.cmpi ne, %172, %c0_i32_114 : i32
    scf.if %173 {
      %c0_115 = arith.constant 0 : index
      %c0_116 = arith.constant 0 : index
      %c0_117 = arith.constant 0 : index
      %174 = vector.load %arg15[%c0_115, %c0_116, %c0_117] : memref<4x8x1xf32, #tpu.memory_space<vmem>>, vector<1x8x1xf32>
      %175 = vector.shape_cast %174 : vector<1x8x1xf32> to vector<8x1xf32>
      %176 = tpu.reciprocal %175 : vector<8x1xf32> -> vector<8x1xf32>
      %c0_118 = arith.constant 0 : index
      %c0_119 = arith.constant 0 : index
      %c0_120 = arith.constant 0 : index
      %177 = vector.load %arg13[%c0_118, %c0_119, %c0_120] : memref<4x8x8xf32, #tpu.memory_space<vmem>>, vector<1x8x8xf32>
      %178 = vector.shape_cast %177 : vector<1x8x8xf32> to vector<8x8xf32>
      %179 = vector.broadcast %176 : vector<8x1xf32> to vector<8x8xf32>
      %180 = arith.mulf %178, %179 : vector<8x8xf32>
      %c1_121 = arith.constant 1 : index
      %c0_122 = arith.constant 0 : index
      %c0_123 = arith.constant 0 : index
      %181 = vector.load %arg15[%c1_121, %c0_122, %c0_123] : memref<4x8x1xf32, #tpu.memory_space<vmem>>, vector<1x8x1xf32>
      %182 = vector.shape_cast %181 : vector<1x8x1xf32> to vector<8x1xf32>
      %183 = tpu.reciprocal %182 : vector<8x1xf32> -> vector<8x1xf32>
      %c1_124 = arith.constant 1 : index
      %c0_125 = arith.constant 0 : index
      %c0_126 = arith.constant 0 : index
      %184 = vector.load %arg13[%c1_124, %c0_125, %c0_126] : memref<4x8x8xf32, #tpu.memory_space<vmem>>, vector<1x8x8xf32>
      %185 = vector.shape_cast %184 : vector<1x8x8xf32> to vector<8x8xf32>
      %186 = vector.broadcast %183 : vector<8x1xf32> to vector<8x8xf32>
      %187 = arith.mulf %185, %186 : vector<8x8xf32>
      %c2_127 = arith.constant 2 : index
      %c0_128 = arith.constant 0 : index
      %c0_129 = arith.constant 0 : index
      %188 = vector.load %arg15[%c2_127, %c0_128, %c0_129] : memref<4x8x1xf32, #tpu.memory_space<vmem>>, vector<1x8x1xf32>
      %189 = vector.shape_cast %188 : vector<1x8x1xf32> to vector<8x1xf32>
      %190 = tpu.reciprocal %189 : vector<8x1xf32> -> vector<8x1xf32>
      %c2_130 = arith.constant 2 : index
      %c0_131 = arith.constant 0 : index
      %c0_132 = arith.constant 0 : index
      %191 = vector.load %arg13[%c2_130, %c0_131, %c0_132] : memref<4x8x8xf32, #tpu.memory_space<vmem>>, vector<1x8x8xf32>
      %192 = vector.shape_cast %191 : vector<1x8x8xf32> to vector<8x8xf32>
      %193 = vector.broadcast %190 : vector<8x1xf32> to vector<8x8xf32>
      %194 = arith.mulf %192, %193 : vector<8x8xf32>
      %c3_133 = arith.constant 3 : index
      %c0_134 = arith.constant 0 : index
      %c0_135 = arith.constant 0 : index
      %195 = vector.load %arg15[%c3_133, %c0_134, %c0_135] : memref<4x8x1xf32, #tpu.memory_space<vmem>>, vector<1x8x1xf32>
      %196 = vector.shape_cast %195 : vector<1x8x1xf32> to vector<8x1xf32>
      %197 = tpu.reciprocal %196 : vector<8x1xf32> -> vector<8x1xf32>
      %c3_136 = arith.constant 3 : index
      %c0_137 = arith.constant 0 : index
      %c0_138 = arith.constant 0 : index
      %198 = vector.load %arg13[%c3_136, %c0_137, %c0_138] : memref<4x8x8xf32, #tpu.memory_space<vmem>>, vector<1x8x8xf32>
      %199 = vector.shape_cast %198 : vector<1x8x8xf32> to vector<8x8xf32>
      %200 = vector.broadcast %197 : vector<8x1xf32> to vector<8x8xf32>
      %201 = arith.mulf %199, %200 : vector<8x8xf32>
      %202 = tpu.concatenate %180, %187, %194, %201 in 1 : vector<8x8xf32>, vector<8x8xf32>, vector<8x8xf32>, vector<8x8xf32> -> vector<8x32xf32>
      %c0_139 = arith.constant 0 : index
      %c0_140 = arith.constant 0 : index
      %203 = vector.load %arg10[%c0_139, %c0_140] : memref<32x32xf32, #tpu.memory_space<vmem>>, vector<32x32xf32>
      %cst_141 = arith.constant dense<0.000000e+00> : vector<8x32xf32>
      %204 = tpu.matmul %202, %203, %cst_141 {dimension_numbers = #tpu.dot_dimension_numbers<[1], [0], [0], [1], [0, 0, 1, 1], [], []>} : vector<8x32xf32>, vector<32x32xf32>, vector<8x32xf32> -> vector<8x32xf32>
      %c0_142 = arith.constant 0 : index
      %c0_143 = arith.constant 0 : index
      %c0_144 = arith.constant 0 : index
      %205 = vector.load %arg11[%c0_142, %c0_143, %c0_144] : memref<1x8x32xf32, #tpu.memory_space<vmem>>, vector<1x8x32xf32>
      %206 = vector.shape_cast %205 : vector<1x8x32xf32> to vector<8x32xf32>
      %207 = vector.shape_cast %204 : vector<8x32xf32> to vector<1x8x32xf32>
      tpu.vector_store %arg11[%c0_142, %c0_143, %c0_144], %207 {strides = array<i32>} : memref<1x8x32xf32, #tpu.memory_space<vmem>>, vector<1x8x32xf32>,
    } else {
    }
    return
  }
  func.func @transform_0(%arg0: i32, %arg1: i32, %arg2: i32, %arg3: memref<2xi32, #tpu.memory_space<smem>>) -> (i32, i32, i32) {
    %c0_i32 = arith.constant 0 : i32
    %c0_i32_0 = arith.constant 0 : i32
    return %arg0, %arg1, %c0_i32 : i32, i32, i32
  }
  func.func @transform_1(%arg0: i32, %arg1: i32, %arg2: i32, %arg3: memref<2xi32, #tpu.memory_space<smem>>) -> (i32, i32, i32) {
    %c0_i32 = arith.constant 0 : i32
    %c0_i32_0 = arith.constant 0 : i32
    return %arg0, %arg2, %c0_i32 : i32, i32, i32
  }
  func.func @transform_2(%arg0: i32, %arg1: i32, %arg2: i32, %arg3: memref<2xi32, #tpu.memory_space<smem>>) -> (i32, i32, i32) {
    %c0_i32 = arith.constant 0 : i32
    %c0_i32_0 = arith.constant 0 : i32
    return %arg0, %arg2, %c0_i32 : i32, i32, i32
  }
  func.func @transform_3(%arg0: i32, %arg1: i32, %arg2: i32, %arg3: memref<2xi32, #tpu.memory_space<smem>>) -> (i32, i32) {
    %c0_i32 = arith.constant 0 : i32
    %c0_i32_0 = arith.constant 0 : i32
    %c0_i32_1 = arith.constant 0 : i32
    return %c0_i32, %c0_i32_0 : i32, i32
  }
  func.func @transform_4(%arg0: i32, %arg1: i32, %arg2: i32, %arg3: memref<2xi32, #tpu.memory_space<smem>>) -> (i32, i32) {
    %c0_i32 = arith.constant 0 : i32
    %c0_i32_0 = arith.constant 0 : i32
    %c0_i32_1 = arith.constant 0 : i32
    return %c0_i32, %c0_i32_0 : i32, i32
  }
  func.func @transform_5(%arg0: i32, %arg1: i32, %arg2: i32, %arg3: memref<2xi32, #tpu.memory_space<smem>>) -> (i32, i32) {
    %c0_i32 = arith.constant 0 : i32
    %c0_i32_0 = arith.constant 0 : i32
    %c0_i32_1 = arith.constant 0 : i32
    return %c0_i32, %c0_i32_0 : i32, i32
  }
  func.func @transform_6(%arg0: i32, %arg1: i32, %arg2: i32, %arg3: memref<2xi32, #tpu.memory_space<smem>>) -> (i32, i32) {
    %c0_i32 = arith.constant 0 : i32
    %c0_i32_0 = arith.constant 0 : i32
    %c0_i32_1 = arith.constant 0 : i32
    return %c0_i32, %c0_i32_0 : i32, i32
  }
  func.func @transform_7(%arg0: i32, %arg1: i32, %arg2: i32, %arg3: memref<2xi32, #tpu.memory_space<smem>>) -> (i32, i32, i32) {
    %c0_i32 = arith.constant 0 : i32
    %c0_i32_0 = arith.constant 0 : i32
    return %arg0, %arg1, %c0_i32 : i32, i32, i32
  }
}

</mosaic_0001>

<bundles_post_ra>
// kernel: tpu_custom_call.1
= control target key start
LH: loop header
LB: loop body
LE: loop exit
PB: predicated region body
PF: predicated region fallthrough
CT: control target
= control target key end

     0   :  { %s2399_s27 = smov [#allocation7]   ;;  %s2880_s0 = inlined_call_operand.hbm [shape: s32[2], index: 0, kind: input, shape index: {}]   ;;  %s2881_s1 = inlined_call_operand.hbm [shape: f32[2,8,16], index: 1, kind: input, shape index: {}]   ;;  %s2882_s2 = inlined_call_operand.hbm [shape: f32[2,8,16], index: 2, kind: input, shape index: {}]   ;;  %s2883_s3 = inlined_call_operand.hbm [shape: f32[2,8,16], index: 3, kind: input, shape index: {}]   ;;  %s2884_s4 = inlined_call_operand.hbm [shape: f32[16,32], index: 4, kind: input, shape index: {}]   ;;  %s2885_s5 = inlined_call_operand.hbm [shape: f32[16,32], index: 5, kind: input, shape index: {}]   ;;  %s2886_s6 = inlined_call_operand.hbm [shape: f32[16,32], index: 6, kind: input, shape index: {}]   ;;  %s2887_s7 = inlined_call_operand.hbm [shape: f32[32,32], index: 7, kind: input, shape index: {}]   ;;  %s2888_s8 = inlined_call_operand.hbm [shape: f32[2,8,32], index: 8, kind: output, shape index: {}]  }
   0x1   :  { %2903 = sst [smem:[#allocation32_spill]] %s2882_s2 }
   0x2   :  { %2904 = sst [smem:[#allocation33_spill]] %s2884_s4 }
   0x3   :  { %2905 = sst [smem:[#allocation34_spill]] %s2885_s5 }
   0x4   :  { %2906 = sst [smem:[#allocation35_spill]] %s2886_s6 }
   0x5   :  { %14 = dma.hbm_to_smem %s2880_s0, 16, %s2399_s27, [#allocation6] }
   0x6   :  { %2353 = dma.done.wait [#allocation6], 16 }
   0x7   :  { %2354 = vsyncadd [#allocation6], 4294967280 }
   0x8   :  { %16 = sfence }
   0x9   :  { %17 = vsyncpa [#allocation9], 0 }
   0xa   :  { %19 = vsyncpa [#allocation9 + $0x1], 0 }
   0xb   :  { %20 = vsyncpa [#allocation12], 0 }
   0xc   :  { %22 = vsyncpa [#allocation12 + $0x1], 0 }
   0xd   :  { %23 = vsyncpa [#allocation15], 0 }
   0xe   :  { %24 = vsyncpa [#allocation18], 0 }
   0xf   :  { %25 = vsyncpa [#allocation10], 0 }
  0x10   :  { %27 = vsyncpa [#allocation10 + $0x1], 0  ;;  %s2468_s30 = smov 0   ;;  %s2470_s9 = smov 0  }
  0x11   :  { %s2472_s10 = smov 0   ;;  %s2474_s11 = smov 0  }
  0x12   :  { %s2476_s0 = smov 0   ;;  %s2478_s12 = smov 0  }
  0x13 LB: > { %2907 = sst [smem:[#allocation27_spill]] %s2393_s0  ;;  %s2499_s13 = sadd.s32 4294967295, %s2397_s12   ;;  %s2397_s12 = sphi %s2478_s12, %s33_s12   ;;  %s2393_s0 = sphi %s2476_s0, %s2943_s0   ;;  %s2389_s11 = sphi %s2474_s11, %s2942_s11   ;;  %s2385_s10 = sphi %s2472_s10, %s2946_s10   ;;  %s2381_s9 = sphi %s2470_s9, %s2945_s9   ;;  %s2377_s30 = sphi %s2468_s30, %s2944_s30  }
  0x14   : > { %2908 = sst [smem:[#allocation28_spill]] %s2397_s12  ;;  %p1812_p0 = scmp.ge.s32.totalorder %s2397_s12, 1 }
  0x15   : > { %p2896_p1 = scmp.eq.s32.totalorder %s2499_s13, 0  ;;  %p253_p2 = scmp.lt.s32.totalorder %s2397_s12, 3 }
  0x16   : > { %s2400_s15 = smov [#allocation14]   ;;  %s2401_s18 = smov [#allocation17]  }
  0x17   : > { %p2504_p3 = pnand %p1812_p0, %p253_p2  ;;  %s265_s16 = sshll.u32 %s2400_s15, 4  ;;  %s266_s16 = int_to_ptr.vmem [resolvable:$true] %s265_s16 }
  0x18   : > { %s291_s19 = sshll.u32 %s2401_s18, 4  ;;  %s2126_s20 = scalar_lea.vmem %s266_s16, 256  ;;  %s292_s19 = int_to_ptr.vmem [resolvable:$true] %s291_s19 }
  0x19   : > { %p1979_p4 = pneg %p2504_p3  ;;  %p2127_p8 = scmp.ne.s32.totalorder %s266_s16, %s2126_s20 }
  0x1a   : > { %p2134_p11 = scmp.lt.s32.totalorder %s266_s16, %s266_s16  ;;  %p2135_p12 = scmp.lt.s32.totalorder %s2126_s20, %s2126_s20 }
  0x1b   : > { %p2513_p6 = pnand %p1979_p4, %p2896_p1 }
  0x1c   : > { %p2136_p13 = por %p2135_p12, %p2134_p11 }
  0x1d   : > { %p2897_p7 = pneg %p2513_p6 }
  0x1f   : > { %p2129_p9 = pnand %p2127_p8, %p2897_p7 }
  0x21   : > { %p2130_p10 = pneg %p2129_p9 }
  0x23   : > { %p2137_p0 = pnand %p2136_p13, %p2130_p10 }
  0x25   : > { %2140 = shalt.err (!%p2137_p0)
}
  0x26   : > { %s2889_s21 = smov 128   ;;  %s2891_s22 = smov 8  }
  0x27   : > { %s2911_s4 = sld [smem:[#allocation33_spill]]  ;;  %s2152_s25 = scalar_lea.vmem %s292_s19, 256 }
  0x28   : > { %p2153_p2 = scmp.ne.s32.totalorder %s292_s19, %s2152_s25  ;;  %p2160_p9 = scmp.lt.s32.totalorder %s292_s19, %s292_s19 }
  0x29   : > { %p2161_p10 = scmp.lt.s32.totalorder %s2152_s25, %s2152_s25 }
  0x2a   : > { %p2155_p4 = pnand %p2153_p2, %p2897_p7 }
  0x2b   : > { %p2162_p11 = por %p2161_p10, %p2160_p9 }
  0x2c   : > { %p2156_p8 = pneg %p2155_p4 }
  0x2d   : > { %1982 = dma.hbm_to_vmem [thread:$0]  (!%p2513_p6), %s2911_s4, 256, %s266_s16, [#allocation15], %s2889_s21, %s2889_s21, %s2891_s22  }
  0x2e   : > { %p2163_p12 = pnand %p2162_p11, %p2156_p8 }
  0x30   : > { %2166 = shalt.err (!%p2163_p12)
}
  0x31   : > { %s2912_s6 = sld [smem:[#allocation35_spill]]  ;;  %s1811_s28 = sadd.s32 4294967294, %s2397_s12  }
  0x32   : > { %s52_s29 = sadd.s32 1, %s2393_s0  ;;  %s61_s15 = sadd.s32 1, %s2385_s10 }
  0x33   : > { %p54_p13 = scmp.ge.s32.totalorder %s52_s29, 2  ;;  %p68_p0 = scmp.ne.s32.totalorder %s2385_s10, %s2381_s9 }
  0x34   : > { %p69_p2 = scmp.eq.s32.totalorder %s2397_s12, 0  ;;  %p74_p8 = scmp.ne.s32.totalorder %s2381_s9, %s2377_s30 }
  0x35   : > { %s2948_s29 = smov (%p54_p13, %s52_s29), 0  ;;  %p240_p9 = scmp.eq.s32.totalorder %s2499_s13, 1 }
  0x36   : > { %2913 = sst [smem:[#allocation29_spill]] %s2948_s29  ;;  %p2549_p4 = por %p69_p2, %p68_p0 }
  0x37   : > { %1988 = dma.hbm_to_vmem [thread:$0]  (!%p2513_p6), %s2912_s6, 256, %s292_s19, [#allocation18], %s2889_s21, %s2889_s21, %s2891_s22  }
  0x38   : > { %s56_s18 = ssub.s32 %s2393_s0, %s2948_s29  ;;  %p2560_p11 = por %p2896_p1, %p74_p8 }
  0x39   : > { %p59_p10 = scmp.eq.s32.totalorder %s56_s18, 0  ;;  %p2564_p12 = por %p240_p9, %p68_p0 }
  0x3a   : > { %p246_p13 = scmp.eq.s32.totalorder %s1811_s28, 1  ;;  %p2010_p5 = scmp.lt.s32.totalorder %s2397_s12, 2 }
  0x3b   : > { %s2916_s20 = scalar_select %p2564_p12, 1, 0 }
  0x3c   : > { %s2569_s23 = scalar_select %p59_p10, %s2385_s10, %s61_s15  }
  0x3d   : > { %p2571_p2 = por %p246_p13, %p74_p8  ;;  %s2894_s25 = sand.u32 1, %s2385_s10  }
  0x3e   : > { %2917 = sst [smem:[#allocation30_spill]] %s2569_s23  ;;  %s2578_s26 = sshll.u32 %s2393_s0, 7 }
  0x3f   : > { %s2918_s24 = scalar_select %p2571_p2, 1, 0 }
  0x40   : > { %s2582_s27 = sshll.u32 %s2894_s25, 3  ;;  %p2586_p0 = pnand %p2010_p5, %p2549_p4 }
  0x41   : > { %2919 = sst [smem:[#allocation31_spill]] %s2918_s24  ;;  %s337_s28 = sand.u32 1, %s2397_s12  }
  0x42   : > { %s2921_s2 = sld [smem:[#allocation32_spill]]  ;;  %s341_s4 = scalar_lea.vmem [#allocation11], %s2582_s27 }
  0x43   : > { %s349_s6 = sshll.u32 %s341_s4, 4  ;;  %s2596_s29 = scalar_lea.sflag [#allocation12], %s337_s28  ;;  %s350_s6 = int_to_ptr.vmem [resolvable:$true] %s349_s6 }
  0x44   : > { %p2898_p8 = pneg %p2586_p0  ;;  %s2180_s16 = scalar_lea.vmem %s350_s6, 128 }
  0x45   : > { %p2181_p9 = scmp.ne.s32.totalorder %s350_s6, %s2180_s16  ;;  %s2404_s25 = smov [#allocation11]  }
  0x46   : > { %s2185_s0 = sshll.u32 %s2404_s25, 4  ;;  %s2186_s0 = int_to_ptr.vmem [resolvable:$false] %s2185_s0 }
  0x47   : > { %p2183_p5 = pnand %p2181_p9, %p2898_p8  ;;  %s2187_s23 = scalar_lea.vmem %s2186_s0, 256 }
  0x48   : > { %s347_s22 = scalar_lea.hbm %s2921_s2, %s2578_s26  ;;  %p2188_p10 = scmp.lt.s32.totalorder %s350_s6, %s2186_s0 }
  0x49   : > { %p2184_p4 = pneg %p2183_p5  ;;  %p2189_p13 = scmp.lt.s32.totalorder %s2187_s23, %s2180_s16 }
  0x4b   : > { %p2190_p1 = por %p2189_p13, %p2188_p10 }
  0x4d   : > { %p2191_p7 = pnand %p2190_p1, %p2184_p4 }
  0x4f   : > { %2194 = shalt.err (!%p2191_p7)
}
  0x50   : > { %1998 = dma.hbm_to_vmem [thread:$0]  (!%p2586_p0), %s347_s22, 128, %s350_s6, %s2596_s29  }
  0x51   : > { %s2405_s4 = smov [#allocation16]   ;;  %s2406_s28 = smov [#allocation19]  }
  0x52   : > { %s278_s21 = sshll.u32 %s2405_s4, 4  ;;  %s304_s15 = sshll.u32 %s2406_s28, 4  ;;  %s279_s21 = int_to_ptr.vmem [resolvable:$true] %s278_s21  ;;  %s305_s15 = int_to_ptr.vmem [resolvable:$true] %s304_s15 }
  0x53   : > { %s2206_s2 = scalar_lea.vmem %s279_s21, 256  ;;  %p2922_p5 = pneg %p2513_p6 }
  0x54   : > { %p2207_p9 = scmp.ne.s32.totalorder %s279_s21, %s2206_s2  ;;  %p2214_p12 = scmp.lt.s32.totalorder %s279_s21, %s279_s21 }
  0x55   : > { %p2215_p10 = scmp.lt.s32.totalorder %s2206_s2, %s2206_s2 }
  0x56   : > { %p2209_p8 = pnand %p2207_p9, %p2922_p5 }
  0x57   : > { %p2216_p1 = por %p2215_p10, %p2214_p12 }
  0x58   : > { %p2210_p2 = pneg %p2209_p8 }
  0x5a   : > { %p2217_p7 = pnand %p2216_p1, %p2210_p2 }
  0x5c   : > { %2220 = shalt.err (!%p2217_p7)
}
  0x5d   : > { %s2923_s0 = smov 8   ;;  %s2924_s6 = smov 128  }
  0x5e   : > { %s2925_s5 = sld [smem:[#allocation34_spill]]  ;;  %s2232_s25 = scalar_lea.vmem %s305_s15, 512 }
  0x5f   : > { %p2233_p4 = scmp.ne.s32.totalorder %s305_s15, %s2232_s25  ;;  %p2926_p8 = pmov %p2922_p5 }
  0x60   : > { %p2240_p12 = scmp.lt.s32.totalorder %s305_s15, %s305_s15  ;;  %p2241_p2 = scmp.lt.s32.totalorder %s2232_s25, %s2232_s25 }
  0x61   : > { %p2235_p13 = pnand %p2233_p4, %p2926_p8 }
  0x62   : > { %p2242_p5 = por %p2241_p2, %p2240_p12 }
  0x63   : > { %p2236_p9 = pneg %p2235_p13 }
  0x64   : > { %1985 = dma.hbm_to_vmem [thread:$0]  (!%p2513_p6), %s2925_s5, 256, %s279_s21, [#allocation15], %s2924_s6, %s2924_s6, %s2923_s0  }
  0x65   : > { %p2243_p10 = pnand %p2242_p5, %p2236_p9 }
  0x67   : > { %2246 = shalt.err (!%p2243_p10)
}
  0x68   : > { %1991 = dma.hbm_to_vmem [thread:$0]  (!%p2513_p6), %s2887_s7, 512, %s305_s15, [#allocation18], %s2924_s6, %s2924_s6, %s2923_s0  }
  0x69   : > { %s328_s28 = scalar_lea.hbm %s2881_s1, %s2578_s26  ;;  %s322_s22 = scalar_lea.vmem [#allocation8], %s2582_s27 }
  0x6a   : > { %s330_s23 = sshll.u32 %s322_s22, 4  ;;  %s366_s5 = scalar_lea.hbm %s2883_s3, %s2578_s26  ;;  %s331_s23 = int_to_ptr.vmem [resolvable:$true] %s330_s23 }
  0x6b   : > { %s2927_s12 = sand.u32 1, %s2385_s10   ;;  %s2260_s2 = scalar_lea.vmem %s331_s23, 128 }
  0x6c   : > { %s319_s24 = scalar_lea.sflag [#allocation9], %s2927_s12  ;;  %p2261_p1 = scmp.ne.s32.totalorder %s331_s23, %s2260_s2 }
  0x6d   : > { %p2928_p7 = pneg %p2586_p0  ;;  %s2407_s15 = smov [#allocation8]  }
  0x6e   : > { %s2265_s0 = sshll.u32 %s2407_s15, 4  ;;  %s2266_s0 = int_to_ptr.vmem [resolvable:$false] %s2265_s0 }
  0x6f   : > { %p2263_p4 = pnand %p2261_p1, %p2928_p7  ;;  %s2267_s6 = scalar_lea.vmem %s2266_s0, 256 }
  0x70   : > { %p2268_p6 = scmp.lt.s32.totalorder %s331_s23, %s2266_s0  ;;  %p2269_p13 = scmp.lt.s32.totalorder %s2267_s6, %s2260_s2 }
  0x71   : > { %p2264_p8 = pneg %p2263_p4 }
  0x72   : > { %p2270_p9 = por %p2269_p13, %p2268_p6 }
  0x74   : > { %p2271_p12 = pnand %p2270_p9, %p2264_p8 }
  0x76   : > { %2274 = shalt.err (!%p2271_p12)
}
  0x77   : > { %1995 = dma.hbm_to_vmem [thread:$0]  (!%p2586_p0), %s328_s28, 128, %s331_s23, %s319_s24  }
  0x78   : > { %s360_s12 = scalar_lea.vmem [#allocation13], %s2582_s27  ;;  %p2929_p5 = pmov %p2928_p7 }
  0x79   : > { %s368_s16 = sshll.u32 %s360_s12, 4  ;;  %s2408_s21 = smov [#allocation13]   ;;  %s369_s16 = int_to_ptr.vmem [resolvable:$true] %s368_s16 }
  0x7a   : > { %s2288_s4 = scalar_lea.vmem %s369_s16, 128  ;;  %s2293_s22 = sshll.u32 %s2408_s21, 4  ;;  %s2294_s22 = int_to_ptr.vmem [resolvable:$false] %s2293_s22 }
  0x7b   : > { %p2289_p2 = scmp.ne.s32.totalorder %s369_s16, %s2288_s4  ;;  %s2295_s17 = scalar_lea.vmem %s2294_s22, 256 }
  0x7c   : > { %p2296_p7 = scmp.lt.s32.totalorder %s369_s16, %s2294_s22  ;;  %p2297_p4 = scmp.lt.s32.totalorder %s2295_s17, %s2288_s4 }
  0x7d   : > { %p2291_p10 = pnand %p2289_p2, %p2929_p5 }
  0x7e   : > { %p2298_p8 = por %p2297_p4, %p2296_p7 }
  0x7f   : > { %p2292_p1 = pneg %p2291_p10 }
  0x81   : > { %p2299_p6 = pnand %p2298_p8, %p2292_p1 }
  0x83   : > { %2302 = shalt.err (!%p2299_p6)
}
  0x84   : > { %2001 = dma.hbm_to_vmem [thread:$0]  (!%p2586_p0), %s366_s5, 128, %s369_s16, %s2596_s29  }
  0x85   : > { %377 = sbr.rel (%p2504_p3) target bundleno = 1570 (0x622), region = 48  ;;  %s2659_s28 = sand.u32 (!%p2504_p3), 1, %s2381_s9  }
  0x86   : > { %s2662_s23 = sshll.u32 (!%p2504_p3), %s2659_s28, 3  ;;  %s380_s18 = scalar_lea.sflag (!%p2504_p3), [#allocation9], %s2659_s28 }
  0x87   : > { %s383_s25 = scalar_lea.vmem (!%p2504_p3), [#allocation8], %s2662_s23 }
  0x8a   : > { %2356 = dma.done.wait (%p2560_p11), %s380_s18, 128  }
  0x8b   : > { %2358 = vsyncadd (%p2560_p11), %s380_s18, 4294967168  ;;  %s388_s5 = sand.u32 1, %s2499_s13   ;;  %s392_s29 = scalar_lea.vmem [#allocation11], %s2662_s23 }
  0x8c   : > { %s389_s14 = scalar_lea.sflag [#allocation12], %s388_s5 }
  0x8d   : > { %2360 = dma.done.wait (%p2560_p11), %s389_s14, 256  }
  0x8e   : > { %2362 = vsyncadd (%p2560_p11), %s389_s14, 4294967040  ;;  %s401_s26 = scalar_lea.vmem [#allocation13], %s2662_s23  ;;  %p2930_p3 = scmp.eq.s32.totalorder %s2499_s13, 0 }
  0x90   : > { %2364 = dma.done.wait (%p2930_p3), [#allocation15], 512   ;;  %p2931_p0 = pmov %p2930_p3 }
  0x92   : > { %2366 = vsyncadd (%p2931_p0), [#allocation15], 4294966784  ;;  %p2932_p13 = pmov %p2931_p0 }
  0x93   : > { %p2933_p9 = pmov %p2931_p0 }
  0x94   : > { %2368 = dma.done.wait (%p2932_p13), [#allocation18], 768  }
  0x95   : > { %2370 = vsyncadd (%p2933_p9), [#allocation18], 4294966528  ;;  %v2409_v0 = vmov 0.0   ;;  %vm2410_vm0 = vmmov 0   ;;  %v464_v1 = vld [vmem:[#allocation14 + $0x8] sm:$0xff]  ;;  %v574_v2 = vld [vmem:[#allocation16 + $0x8] sm:$0xff]  ;;  %v726_v25 = vlaneseq }
  0x96   : > { %1883 = vmatprep.subr.mxu0 %v2409_v0  ;;  %1890 = vmatprep.subr.mxu1 %v2409_v0  ;;  %v463_v3 = vld [vmem:[#allocation14] sm:$0xff]  ;;  %v573_v4 = vld [vmem:[#allocation16] sm:$0xff]  ;;  %vm465_vm1 = vcmask 130048   ;;  %vm540_vm2 = vcmask 64512   ;;  %s2411_s13 = smov 120   ;;  %s2412_s19 = smov 104  }
  0x97   : > { %1887 = vmatprep.mubr.msk.f32.mxu0 %vm2410_vm0, %v2409_v0  ;;  %1894 = vmatprep.mubr.msk.f32.mxu1 %vm2410_vm0, %v2409_v0  ;;  %v462_v5 = vld [vmem:[%s383_s25] sm:$0xff]  ;;  %v571_v6 = vld [vmem:[%s392_s29] sm:$0xff]  ;;  %567 = vst.msk [vmem:[#allocation3] sm:$0xff] %vm540_vm2, %v2409_v0  ;;  %568 = vst.msk [vmem:[#allocation3 + $0x8] sm:$0xff] %vm540_vm2, %v2409_v0  ;;  %s2413_s2 = smov 112   ;;  %s724_s15 = sld [smem:[#allocation7 + %s2389_s11]] }
  0x98   : > { %1884 = vmatpush3.msra.mxu0 %v464_v1  ;;  %1891 = vmatpush3.msra.mxu1 %v574_v2  ;;  %569 = vst.msk [vmem:[#allocation3 + $0x10] sm:$0xff] %vm540_vm2, %v2409_v0  ;;  %570 = vst.msk [vmem:[#allocation3 + $0x18] sm:$0xff] %vm540_vm2, %v2409_v0  ;;  %v650_v13 = vld [vmem:[#allocation17 + $0x8] sm:$0xff]  ;;  %v649_v14 = vld [vmem:[#allocation17] sm:$0xff]  ;;  %v727_v26 = vand.u32 127, %v726_v25  ;;  %vm558_vm4 = vcmask 7168  }
  0x99   : > { %1885 = vmatprep.subr.mxu0 %v2409_v0  ;;  %1892 = vmatprep.subr.mxu1 %v2409_v0  ;;  %v572_v15 = vld [vmem:[%s401_s26] sm:$0xff]  ;;  %v2414_v29 = vmov -inf   ;;  %563 = vst.msk [vmem:[#allocation5] sm:$0xff] %vm558_vm4, %v2409_v0  ;;  %564 = vst.msk [vmem:[#allocation5 + $0x8] sm:$0xff] %vm558_vm4, %v2409_v0  ;;  %v2415_v34 = vmov 0   ;;  %s2416_s0 = smov 8  }
  0x9a   : > { %1886 = vmatpush3.msra.mxu0 %v463_v3  ;;  %1893 = vmatpush3.msra.mxu1 %v573_v4  ;;  %559 = vst.msk [vmem:[#allocation4] sm:$0xff] %vm558_vm4, %v2414_v29  ;;  %560 = vst.msk [vmem:[#allocation4 + $0x8] sm:$0xff] %vm558_vm4, %v2414_v29  ;;  %s2417_s6 = smov 16   ;;  %s2418_s12 = smov 24   ;;  %vm1548_vm5 = vcmask 195584   ;;  %vm1554_vm6 = vcmask 261120  }
  0x9b   : > { %1888 = vmatmul.mubr.msk.f32.vlgmr.msra.gmra.mxu0 %vm465_vm1, %v462_v5  ;;  %1895 = vmatmul.mubr.msk.f32.vlgmr.msra.gmra.mxu1 %vm465_vm1, %v571_v6  ;;  %561 = vst.msk [vmem:[#allocation4 + $0x10] sm:$0xff] %vm558_vm4, %v2414_v29  ;;  %562 = vst.msk [vmem:[#allocation4 + $0x18] sm:$0xff] %vm558_vm4, %v2414_v29  ;;  %s1850_s16 = sshll.u32 %s2389_s11, 7  ;;  %s457_s4 = scalar_lea.vmem [#allocation20], %s2662_s23 }
  0x9c   : > { %1904 = vmatprep.subr.mxu1 %v2409_v0  ;;  %1906 = vmatprep.mubr.msk.f32.mxu1 %vm2410_vm0, %v2409_v0  ;;  %565 = vst.msk [vmem:[#allocation5 + $0x10] sm:$0xff] %vm558_vm4, %v2409_v0  ;;  %566 = vst.msk [vmem:[#allocation5 + $0x18] sm:$0xff] %vm558_vm4, %v2409_v0  ;;  %s1644_s21 = sshll.u32 %s457_s4, 4  ;;  %s2832_s24 = scalar_lea.hbm %s2888_s8, %s1850_s16  ;;  %s2834_s21 = int_to_ptr.vmem [resolvable:$true] %s1644_s21 }
  0x9d   : > { %1897 = vmatprep.subr.mxu0 %v2409_v0  ;;  %1901 = vmatprep.mubr.msk.f32.mxu0 %vm2410_vm0, %v2409_v0  ;;  %v730_v27 = vstv %s724_s15  ;;  %s1630_s27 = scalar_lea.sflag [#allocation10], %s2659_s28  ;;  %s2303_s18 = scalar_lea.vmem %s2834_s21, 128 }
  0x9e   : > { %1898 = vmatpush3.msra.mxu0 %v650_v13  ;;  %vm2747_vm3 = vcmp.lt.s32.totalorder %v727_v26, %v730_v27  ;;  %2081 = vset.pattern.permute.xlu1 %v2415_v34  ;;  %p2304_p11 = scmp.ne.s32.totalorder %s2834_s21, %s2303_s18  ;;  %p2936_p12 = scmp.ne.s32.totalorder %s2916_s20, 0 }
  0x9f   : > { %1899 = vmatprep.subr.mxu0 %v2409_v0  ;;  %2082 = vset.pattern.permute.xlu0 %v2415_v34  ;;  %s2419_s11 = smov [#allocation20]  }
  0xa0   : > { %1900 = vmatpush3.msra.mxu0 %v649_v14  ;;  %v1016_v34 = vld [vmem:[#allocation5 + $0x8] sm:$0xff]  ;;  %p2305_p2 = pnand %p2304_p11, %p2936_p12  ;;  %s2307_s23 = sshll.u32 %s2419_s11, 4  ;;  %s2308_s23 = int_to_ptr.vmem [resolvable:$false] %s2307_s23 }
  0xa1   : > { %1902 = vmatmul.mubr.msk.f32.vlgmr.msra.gmra.mxu0 %vm465_vm1, %v572_v15  ;;  %1909 = vmatprep.subr.mxu0 %v2409_v0  ;;  %v2775_v47 = vld [vmem:[#allocation4] sm:$0xff]  ;;  %v999_v53 = vld [vmem:[#allocation4 + $0x8] sm:$0xff]  ;;  %s2309_s25 = scalar_lea.vmem %s2308_s23, 256  ;;  %p2310_p10 = scmp.lt.s32.totalorder %s2834_s21, %s2308_s23 }
  0xa2   : > { %1911 = vmatprep.mubr.msk.f32.mxu0 %vm2410_vm0, %v2409_v0  ;;  %v1192_v56 = vld [vmem:[#allocation4 + $0x10] sm:$0xff]  ;;  %v1384_v60 = vld [vmem:[#allocation4 + $0x18] sm:$0xff]  ;;  %p2306_p5 = pneg %p2305_p2  ;;  %p2311_p1 = scmp.lt.s32.totalorder %s2309_s25, %s2303_s18 }
  0xa4   : > { %p2312_p7 = por %p2311_p1, %p2310_p10 }
  0xa6   : > { %p2313_p4 = pnand %p2312_p7, %p2306_p5 }
 0x15b   : > { %v535_v7 = vpop.f32.mrf.mxu0  ;;  %v645_v8 = vpop.f32.mrf.mxu1 }
 0x15c   : > { %v539_v9 = vmul.f32 0.35355338, %v535_v7  ;;  %920 = vrot.lane.b32.xlu1 %v645_v8, %s2411_s13  ;;  %1905 = vmatpush3.xpose.msk.msra.mxu1 %vm540_vm2, %v645_v8 }
 0x15d   : > { %v1889_v10 = vpop.f32.mrf.mxu0  ;;  %v1896_v11 = vpop.f32.mrf.mxu1  ;;  %1914 = vmatprep.subr.mxu1 %v2409_v0 }
 0x15e   : > { %541 = vst.msk [vmem:[#allocation2] sm:$0xff] %vm540_vm2, %v539_v9  ;;  %543 = vrot.lane.b32.xlu0 %v539_v9, %s2411_s13 }
 0x160   : > { %553 = vrot.lane.b32.xlu1 %v539_v9, %s2412_s19 }
 0x161   : > { %v720_v51 = vpop.f32.mrf.mxu0 }
 0x162   : > { %548 = vrot.lane.b32.xlu0 %v539_v9, %s2413_s2  ;;  %1910 = vmatpush3.msra.mxu0 %v720_v51 }
 0x163   : > { %v1903_v52 = vpop.f32.mrf.mxu0  ;;  %1919 = vmatprep.subr.mxu0 %v2409_v0 }
 0x164   : > { %1305 = vrot.lane.b32.xlu1 %v645_v8, %s2412_s19 }
 0x165   : > { %v732_v12 = vld [vmem:[#allocation2] sm:$0xff] }
 0x166   : > { %1113 = vrot.lane.b32.xlu0 %v645_v8, %s2413_s2  ;;  %1907 = vmatmul.mubr.msk.f32.vlgmr.msra.gmra.mxu1 %vm540_vm2, %v732_v12 }
 0x167   : > { %1916 = vmatprep.mubr.msk.f32.mxu1 %vm2410_vm0, %v2409_v0 }
 0x1ce   : > { %v921_v16 = vpop.permute.xlu1 %920 }
 0x1cf   : > { %1915 = vmatpush3.xpose.msk.msra.mxu1 %vm540_vm2, %v921_v16 }
 0x1d0   : > { %v544_v17 = vpop.permute.xlu0 %543  ;;  %1924 = vmatprep.subr.mxu1 %v2409_v0 }
 0x1d1   : > { %547 = vst.msk [vmem:[#allocation2 + $0x8] sm:$0xff] %vm540_vm2, %v544_v17 }
 0x1d2   : > { %v554_v18 = vpop.permute.xlu1 %553 }
 0x1d3   : > { %557 = vst.msk [vmem:[#allocation2 + $0x18] sm:$0xff] %vm540_vm2, %v554_v18 }
 0x1d4   : > { %v549_v19 = vpop.permute.xlu0 %548 }
 0x1d5   : > { %552 = vst.msk [vmem:[#allocation2 + $0x10] sm:$0xff] %vm540_vm2, %v549_v19 }
 0x1d6   : > { %v1306_v23 = vpop.permute.xlu1 %1305 }
 0x1d8   : > { %v1114_v20 = vpop.permute.xlu0 %1113  ;;  %v919_v21 = vld [vmem:[#allocation2 + $0x8] sm:$0xff] }
 0x1d9   : > { %1917 = vmatmul.mubr.msk.f32.vlgmr.msra.gmra.mxu1 %vm540_vm2, %v919_v21 }
 0x1da   : > { %1925 = vmatpush3.xpose.msk.msra.mxu1 %vm540_vm2, %v1114_v20  ;;  %1926 = vmatprep.mubr.msk.f32.mxu1 %vm2410_vm0, %v2409_v0  ;;  %v1304_v24 = vld [vmem:[#allocation2 + $0x18] sm:$0xff] }
 0x1db   : > { %1934 = vmatprep.subr.mxu1 %v2409_v0 }
 0x1dc   : > { %v1112_v22 = vld [vmem:[#allocation2 + $0x10] sm:$0xff] }
 0x1dd   : > { %1927 = vmatmul.mubr.msk.f32.vlgmr.msra.gmra.mxu1 %vm540_vm2, %v1112_v22 }
 0x1de   : > { %1935 = vmatpush3.xpose.msk.msra.mxu1 %vm540_vm2, %v1306_v23  ;;  %1936 = vmatprep.mubr.msk.f32.mxu1 %vm2410_vm0, %v2409_v0 }
 0x1df   : > { %1944 = vmatprep.subr.mxu1 %v2409_v0 }
 0x1e1   : > { %1937 = vmatmul.mubr.msk.f32.vlgmr.msra.gmra.mxu1 %vm540_vm2, %v1304_v24 }
 0x1e2   : > { %1952 = vmatprep.mubr.msk.f32.mxu1 %vm2410_vm0, %v2409_v0 }
 0x226   : > { %v806_v30 = vpop.f32.mrf.mxu1 }
 0x227   : > { %v810_v31 = vsel %vm2747_vm3, %v806_v30, -1000000.0 }
 0x228   : > { %v1908_v32 = vpop.f32.mrf.mxu1  ;;  %v812_v33 = vsel %vm540_vm2, %v810_v31, -inf }
 0x229   : > { %813 = vmax.xlane.f32.xlu0 %v812_v33 }
 0x299   : > { %v993_v35 = vpop.f32.mrf.mxu1 }
 0x29a   : > { %v997_v36 = vsel %vm2747_vm3, %v993_v35, -1000000.0 }
 0x29b   : > { %v1918_v37 = vpop.f32.mrf.mxu1  ;;  %v1000_v38 = vsel %vm540_vm2, %v997_v36, -inf }
 0x29c   : > { %1001 = vmax.xlane.f32.xlu1 %v1000_v38  ;;  %v1209_v37 = vld [vmem:[#allocation5 + $0x10] sm:$0xff] }
 0x29d   : > { %v1186_v39 = vpop.f32.mrf.mxu1 }
 0x29e   : > { %v1190_v40 = vsel %vm2747_vm3, %v1186_v39, -1000000.0 }
 0x29f   : > { %v1928_v41 = vpop.f32.mrf.mxu1  ;;  %v1193_v42 = vsel %vm540_vm2, %v1190_v40, -inf }
 0x2a0   : > { %1194 = vmax.xlane.f32.xlu0 %v1193_v42  ;;  %v1401_v41 = vld [vmem:[#allocation5 + $0x18] sm:$0xff] }
 0x2a1   : > { %v1378_v43 = vpop.f32.mrf.mxu1 }
 0x2a2   : > { %v1382_v44 = vsel %vm2747_vm3, %v1378_v43, -1000000.0 }
 0x2a3   : > { %v1938_v45 = vpop.f32.mrf.mxu1  ;;  %v1385_v46 = vsel %vm540_vm2, %v1382_v44, -inf }
 0x2a4   : > { %1386 = vmax.xlane.f32.xlu0 %v1385_v46  ;;  %v827_v46 = vld [vmem:[#allocation5] sm:$0xff] }
 0x2b2   : > { %v814_v48 = vpop.xlane.xlu0 %813 }
 0x2b3   : > { %v2778_v49 = vmax.f32 %v2775_v47, %v814_v48 }
 0x2b5   : > { %v816_v50 = vsub.f32 %v2775_v47, %v2778_v49  ;;  %917 = vst.msk [vmem:[#allocation4] sm:$0xff] %vm558_vm4, %v2778_v49  ;;  %821 = vperm.xlu1 %2081, %v2778_v49  }
 0x2b7   : > { %v817_v33 = vmul.f32 1.442695, %v816_v50 }
 0x325   : > { %v1002_v54 = vpop.xlane.xlu1 %1001 }
 0x326   : > { %v1003_v55 = vmax.f32 %v999_v53, %v1002_v54 }
 0x328   : > { %v1004_v57 = vsub.f32 %v999_v53, %v1003_v55  ;;  %1110 = vst.msk [vmem:[#allocation4 + $0x8] sm:$0xff] %vm558_vm4, %v1003_v55  ;;  %1009 = vperm.xlu0 %2082, %v1003_v55  }
 0x329   : > { %v1195_v58 = vpop.xlane.xlu0 %1194 }
 0x32a   : > { %v1196_v59 = vmax.f32 %v1192_v56, %v1195_v58  ;;  %v1005_v24 = vmul.f32 1.442695, %v1004_v57 }
 0x32c   : > { %v1197_v61 = vsub.f32 %v1192_v56, %v1196_v59  ;;  %1302 = vst.msk [vmem:[#allocation4 + $0x10] sm:$0xff] %vm558_vm4, %v1196_v59  ;;  %1202 = vperm.xlu1 %2081, %v1196_v59   ;;  %v1024_v59 = vld [vmem:[#allocation3 + $0x8] sm:$0xff] }
 0x32d   : > { %v1387_v62 = vpop.xlane.xlu0 %1386 }
 0x32e   : > { %v1388_v63 = vmax.f32 %v1384_v60, %v1387_v62  ;;  %v1198_v25 = vmul.f32 1.442695, %v1197_v61 }
 0x330   : > { %v1389_v1 = vsub.f32 %v1384_v60, %v1388_v63  ;;  %1494 = vst.msk [vmem:[#allocation4 + $0x18] sm:$0xff] %vm558_vm4, %v1388_v63  ;;  %v822_v2 = vpop.permute.xlu1 %821  ;;  %1394 = vperm.xlu1 %2081, %v1388_v63   ;;  %v1217_v63 = vld [vmem:[#allocation3 + $0x10] sm:$0xff] }
 0x331   : > { %v824_v3 = vsub.f32 %v810_v31, %v822_v2 }
 0x332   : > { %v1390_v27 = vmul.f32 1.442695, %v1389_v1 }
 0x333   : > { %v825_v4 = vmul.f32 1.442695, %v824_v3 }
 0x334   : > { %1032 = vrot.lane.b32.xlu1 %v720_v51, %s2411_s13 }
 0x335   : > { %2083 = vpow2.f32 %v825_v4 }
 0x338   : > { %1224 = vrot.lane.b32.xlu1 %v720_v51, %s2413_s2 }
 0x33c   : > { %1416 = vrot.lane.b32.xlu1 %v720_v51, %s2412_s19 }
 0x342   : > { %v2084_v5 = vpop.eup %2083 }
 0x343   : > { %1912 = vmatmul.mubr.msk.f32.vlgmr.msra.gmra.mxu0 %vm540_vm2, %v2084_v5  ;;  %v829_v26 = vsel %vm540_vm2, %v2084_v5, 0.0  ;;  %v1409_v5 = vld [vmem:[#allocation3 + $0x18] sm:$0xff] }
 0x344   : > { %1921 = vmatprep.mubr.msk.f32.mxu0 %vm2410_vm0, %v2409_v0 }
 0x3a3   : > { %v1010_v6 = vpop.permute.xlu0 %1009 }
 0x3a4   : > { %v1012_v7 = vsub.f32 %v997_v36, %v1010_v6 }
 0x3a6   : > { %v1013_v8 = vmul.f32 1.442695, %v1012_v7 }
 0x3a7   : > { %v1203_v9 = vpop.permute.xlu1 %1202 }
 0x3a8   : > { %2085 = vpow2.f32 %v1013_v8  ;;  %v1205_v10 = vsub.f32 %v1190_v40, %v1203_v9 }
 0x3aa   : > { %v1206_v11 = vmul.f32 1.442695, %v1205_v10 }
 0x3ab   : > { %v1395_v12 = vpop.permute.xlu1 %1394 }
 0x3ac   : > { %2087 = vpow2.f32 %v1206_v11  ;;  %v1397_v13 = vsub.f32 %v1382_v44, %v1395_v12 }
 0x3ae   : > { %v1398_v14 = vmul.f32 1.442695, %v1397_v13 }
 0x3af   : > { %v1033_v15 = vpop.permute.xlu1 %1032 }
 0x3b0   : > { %2089 = vpow2.f32 %v1398_v14  ;;  %1920 = vmatpush3.msra.mxu0 %v1033_v15  ;;  %v1553_v14 = vld [vmem:[#allocation19 + $0x18] sm:$0xff]  ;;  %v1552_v15 = vld [vmem:[#allocation19 + $0x10] sm:$0xff] }
 0x3b1   : > { %1929 = vmatprep.subr.mxu0 %v2409_v0  ;;  %2091 = vpow2.f32 %v1005_v24  ;;  %1945 = vmatpush3.msra.mxu1 %v1553_v14  ;;  %v835_v24 = vld [vmem:[#allocation3] sm:$0xff] }
 0x3b2   : > { %2093 = vpow2.f32 %v1198_v25  ;;  %1946 = vmatprep.subr.mxu1 %v2409_v0 }
 0x3b3   : > { %v1225_v16 = vpop.permute.xlu1 %1224  ;;  %2095 = vpow2.f32 %v1390_v27  ;;  %1947 = vmatpush3.msra.mxu1 %v1552_v15 }
 0x3b4   : > { %2097 = vpow2.f32 %v817_v33  ;;  %1948 = vmatprep.subr.mxu1 %v2409_v0 }
 0x3b5   : > { %v2086_v17 = vpop.eup %2085 }
 0x3b6   : > { %1922 = vmatmul.mubr.msk.f32.vlgmr.msra.gmra.mxu0 %vm540_vm2, %v2086_v17  ;;  %v1018_v18 = vsel %vm540_vm2, %v2086_v17, 0.0  ;;  %v1550_v17 = vld [vmem:[#allocation19] sm:$0xff] }
 0x3b7   : > { %1019 = vadd.xlane.f32.xlu1 %v1018_v18  ;;  %1930 = vmatpush3.msra.mxu0 %v1225_v16  ;;  %v1417_v19 = vpop.permute.xlu1 %1416  ;;  %v1551_v16 = vld [vmem:[#allocation19 + $0x8] sm:$0xff] }
 0x3b8   : > { %1931 = vmatprep.mubr.msk.f32.mxu0 %vm2410_vm0, %v2409_v0  ;;  %1939 = vmatprep.subr.mxu0 %v2409_v0 }
 0x3b9   : > { %v2088_v20 = vpop.eup %2087  ;;  %1949 = vmatpush3.msra.mxu1 %v1551_v16 }
 0x3ba   : > { %1932 = vmatmul.mubr.msk.f32.vlgmr.msra.gmra.mxu0 %vm540_vm2, %v2088_v20  ;;  %v1211_v21 = vsel %vm540_vm2, %v2088_v20, 0.0  ;;  %1950 = vmatprep.subr.mxu1 %v2409_v0 }
 0x3bb   : > { %1212 = vadd.xlane.f32.xlu0 %v1211_v21  ;;  %1940 = vmatpush3.msra.mxu0 %v1417_v19 }
 0x3bc   : > { %1941 = vmatprep.mubr.msk.f32.mxu0 %vm2410_vm0, %v2409_v0  ;;  %1951 = vmatpush3.msra.mxu1 %v1550_v17 }
 0x3bd   : > { %v2090_v22 = vpop.eup %2089 }
 0x3be   : > { %1942 = vmatmul.mubr.msk.f32.vlgmr.msra.gmra.mxu0 %vm540_vm2, %v2090_v22  ;;  %v1403_v23 = vsel %vm540_vm2, %v2090_v22, 0.0  ;;  %v2092_v28 = vpop.eup %2091 }
 0x3bf   : > { %1404 = vadd.xlane.f32.xlu1 %v1403_v23  ;;  %v2094_v29 = vpop.eup %2093  ;;  %v1017_v35 = vmul.f32 %v2092_v28, %v1016_v34 }
 0x3c0   : > { %v2096_v30 = vpop.eup %2095  ;;  %v1210_v39 = vmul.f32 %v2094_v29, %v1209_v37 }
 0x3c1   : > { %v1402_v43 = vmul.f32 %v2096_v30, %v1401_v41  ;;  %v2098_v44 = vpop.eup %2097 }
 0x3c2   : > { %v828_v49 = vmul.f32 %v2098_v44, %v827_v46 }
 0x3c3   : > { %830 = vadd.xlane.f32.xlu1 %v829_v26 }
 0x3d1   : > { %1027 = vperm.xlu0 %2082, %v2092_v28  }
 0x3d4   : > { %1220 = vperm.xlu1 %2081, %v2094_v29  }
 0x3d8   : > { %1412 = vperm.xlu1 %2081, %v2096_v30  }
 0x403   : > { %v2808_v31 = vpop.f32.mrf.mxu0 }
 0x405   : > { %v1913_v32 = vpop.f32.mrf.mxu0 }
 0x440   : > { %v1020_v36 = vpop.xlane.xlu1 %1019 }
 0x441   : > { %v1021_v38 = vadd.f32 %v1020_v36, %v1017_v35 }
 0x443   : > { %1022 = vst.msk [vmem:[#allocation5 + $0x8] sm:$0xff] %vm558_vm4, %v1021_v38 }
 0x444   : > { %v1213_v40 = vpop.xlane.xlu0 %1212 }
 0x445   : > { %v1214_v42 = vadd.f32 %v1213_v40, %v1210_v39 }
 0x447   : > { %1215 = vst.msk [vmem:[#allocation5 + $0x10] sm:$0xff] %vm558_vm4, %v1214_v42 }
 0x448   : > { %v1405_v45 = vpop.xlane.xlu1 %1404 }
 0x449   : > { %v1406_v47 = vadd.f32 %v1405_v45, %v1402_v43 }
 0x44a   : > { %v1507_v48 = vld [vmem:[#allocation5 + $0x8] sm:$0xff] }
 0x44b   : > { %1407 = vst.msk [vmem:[#allocation5 + $0x18] sm:$0xff] %vm558_vm4, %v1406_v47  ;;  %2099 = vrcp.f32 %v1507_v48 }
 0x44c   : > { %v831_v50 = vpop.xlane.xlu1 %830  ;;  %v1028_v60 = vpop.permute.xlu0 %1027 }
 0x44d   : > { %v832_v51 = vadd.f32 %v831_v50, %v828_v49  ;;  %v1030_v62 = vmul.f32 %v1028_v60, %v1024_v59 }
 0x44e   : > { %v1516_v52 = vld [vmem:[#allocation5 + $0x10] sm:$0xff] }
 0x44f   : > { %834 = vst.msk [vmem:[#allocation5] sm:$0xff] %vm558_vm4, %v832_v51  ;;  %2101 = vrcp.f32 %v1516_v52 }
 0x450   : > { %v1221_v61 = vpop.permute.xlu1 %1220 }
 0x451   : > { %v1223_v4 = vmul.f32 %v1221_v61, %v1217_v63 }
 0x452   : > { %v1525_v53 = vld [vmem:[#allocation5 + $0x18] sm:$0xff] }
 0x453   : > { %2103 = vrcp.f32 %v1525_v53 }
 0x454   : > { %v1413_v6 = vpop.permute.xlu1 %1412 }
 0x455   : > { %v1415_v10 = vmul.f32 %v1413_v6, %v1409_v5 }
 0x456   : > { %v1498_v54 = vld [vmem:[#allocation5] sm:$0xff] }
 0x457   : > { %2105 = vrcp.f32 %v1498_v54 }
 0x458   : > { %v2100_v55 = vpop.eup %2099 }
 0x459   : > { %1512 = vperm.xlu0 %2082, %v2100_v55  }
 0x45c   : > { %v2102_v56 = vpop.eup %2101 }
 0x45d   : > { %1521 = vperm.xlu1 %2081, %v2102_v56  }
 0x460   : > { %v2104_v57 = vpop.eup %2103 }
 0x461   : > { %838 = vperm.xlu1 %2081, %v2098_v44   ;;  %1530 = vperm.xlu0 %2082, %v2104_v57  }
 0x464   : > { %v2106_v58 = vpop.eup %2105 }
 0x465   : > { %1503 = vperm.xlu0 %2082, %v2106_v58  }
 0x476   : > { %v1104_v1 = vpop.f32.mrf.mxu0 }
 0x477   : > { %v1108_v2 = vadd.f32 %v1104_v1, %v1030_v62 }
 0x478   : > { %v1923_v3 = vpop.f32.mrf.mxu0 }
 0x479   : > { %1109 = vst.msk [vmem:[#allocation3 + $0x8] sm:$0xff] %vm540_vm2, %v1108_v2 }
 0x47a   : > { %v1296_v7 = vpop.f32.mrf.mxu0 }
 0x47b   : > { %v1300_v8 = vadd.f32 %v1296_v7, %v1223_v4 }
 0x47c   : > { %v1933_v9 = vpop.f32.mrf.mxu0 }
 0x47d   : > { %1301 = vst.msk [vmem:[#allocation3 + $0x10] sm:$0xff] %vm540_vm2, %v1300_v8 }
 0x47e   : > { %v1488_v11 = vpop.f32.mrf.mxu0 }
 0x47f   : > { %v1492_v12 = vadd.f32 %v1488_v11, %v1415_v10 }
 0x480   : > { %v1943_v13 = vpop.f32.mrf.mxu0  ;;  %v1509_v19 = vld [vmem:[#allocation3 + $0x8] sm:$0xff] }
 0x481   : > { %1493 = vst.msk [vmem:[#allocation3 + $0x18] sm:$0xff] %vm540_vm2, %v1492_v12 }
 0x484   : > { %v1518_v22 = vld [vmem:[#allocation3 + $0x10] sm:$0xff] }
 0x488   : > { %v1527_v26 = vld [vmem:[#allocation3 + $0x18] sm:$0xff] }
 0x4d4   : > { %v1513_v18 = vpop.permute.xlu0 %1512 }
 0x4d5   : > { %v1515_v20 = vmul.f32 %v1513_v18, %v1509_v19 }
 0x4d7   : > { %1535 = vrot.lane.b32.xlu1 %v1515_v20, %s2416_s0 }
 0x4d8   : > { %v1522_v21 = vpop.permute.xlu1 %1521 }
 0x4d9   : > { %v1524_v23 = vmul.f32 %v1522_v21, %v1518_v22 }
 0x4db   : > { %1539 = vrot.lane.b32.xlu0 %v1524_v23, %s2417_s6 }
 0x4dc   : > { %v1531_v25 = vpop.permute.xlu0 %1530  ;;  %v839_v27 = vpop.permute.xlu1 %838 }
 0x4dd   : > { %v1533_v28 = vmul.f32 %v1531_v25, %v1527_v26  ;;  %v841_v29 = vmul.f32 %v839_v27, %v835_v24 }
 0x4df   : > { %v915_v0 = vadd.f32 %v2808_v31, %v841_v29  ;;  %1543 = vrot.lane.b32.xlu1 %v1533_v28, %s2418_s12 }
 0x4e0   : > { %v1504_v30 = vpop.permute.xlu0 %1503 }
 0x4e1   : > { %916 = vst.msk [vmem:[#allocation3] sm:$0xff] %vm540_vm2, %v915_v0 }
 0x4e8   : > { %v1500_v32 = vld [vmem:[#allocation3] sm:$0xff] }
 0x4e9   : > { %v1506_v34 = vmul.f32 %v1504_v30, %v1500_v32 }
 0x549   : > { %v1536_v33 = vpop.permute.xlu1 %1535 }
 0x54a   : > { %v1546_v36 = vsel %vm540_vm2, %v1506_v34, %v1536_v33 }
 0x54d   : > { %v1540_v35 = vpop.permute.xlu0 %1539 }
 0x54e   : > { %v1547_v37 = vsel %vm465_vm1, %v1546_v36, %v1540_v35 }
 0x551   : > { %v1544_v31 = vpop.permute.xlu1 %1543 }
 0x552   : > { %v1549_v38 = vsel %vm1548_vm5, %v1547_v37, %v1544_v31 }
 0x553   : > { %1953 = vmatmul.mubr.msk.f32.vlgmr.msra.gmra.mxu1 %vm1554_vm6, %v1549_v38 }
 0x613   : > { %v1624_v39 = vpop.f32.mrf.mxu1 }
 0x614   : > { %1628 = vst.msk [vmem:[%s457_s4] sm:$0xff] %vm1554_vm6, %v1624_v39 }
 0x615   : > { %v1954_v40 = vpop.f32.mrf.mxu1 }
 0x616   : > { %2316 = shalt.err (!%p2313_p4)
}
 0x617   : > { %s2317_s5 = scalar_lea.hbm %s2832_s24, 128  ;;  %s2321_s29 = scalar_lea.hbm %s2888_s8, 256 }
 0x618   : > { %p2318_p8 = scmp.ne.s32.totalorder %s2832_s24, %s2317_s5  ;;  %p2322_p0 = scmp.lt.s32.totalorder %s2832_s24, %s2888_s8 }
 0x619   : > { %p2323_p13 = scmp.lt.s32.totalorder %s2321_s29, %s2317_s5 }
 0x61a   : > { %p2319_p6 = pnand %p2318_p8, %p2936_p12 }
 0x61b   : > { %p2324_p9 = por %p2323_p13, %p2322_p0 }
 0x61c   : > { %p2320_p3 = pneg %p2319_p6 }
 0x61e   : > { %p2325_p11 = pnand %p2324_p9, %p2320_p3 }
 0x620   : > { %2328 = shalt.err (!%p2325_p11)
}
 0x621   : > { %1977 = dma.vmem_to_hbm [thread:$0]  (%p2936_p12), %s2834_s21, 128, %s2832_s24, %s1630_s27  }
 0x622 PF: > { %s2937_s19 = sld [smem:[#allocation31_spill]]  ;;  %s1656_s15 = sand.u32 1, %s2377_s30  }
 0x623   : > { %s2938_s2 = sld [smem:[#allocation28_spill]]  ;;  %s1657_s0 = scalar_lea.sflag [#allocation10], %s1656_s15 }
 0x628   : > { %p2939_p2 = scmp.ne.s32.totalorder %s2937_s19, 0 }
 0x629   : > { %p2940_p5 = scmp.ge.s32.totalorder %s2938_s2, 2 }
 0x62b   : > { %p2003_p10 = pnand %p2940_p5, %p2939_p2 }
 0x62d   : > { %p2004_p1 = pneg %p2003_p10 }
 0x62f   : > { %2372 = dma.done.wait (%p2004_p1), %s1657_s0, 128  }
 0x630   : > { %2374 = vsyncadd (%p2004_p1), %s1657_s0, 4294967168  ;;  %s33_s12 = sadd.s32 1, %s2938_s2   ;;  %s2941_s20 = sld [smem:[#allocation30_spill]] }
 0x631   : > { %p30_p7 = scmp.ge.s32.totalorder %s33_s12, 4   ;;  %s2942_s11 = sld [smem:[#allocation27_spill]] }
 0x632   : > { %s2943_s0 = sld [smem:[#allocation29_spill]]  ;;  %s2944_s30 = smov %s2381_s9 }
 0x633   : > { %s2945_s9 = smov %s2385_s10  ;;  %32 = sbr.rel (!%p30_p7) target bundleno = 19 (0x13), region = 156 }
 0x636   : > { %s2946_s10 = smov %s2941_s20 }
 0x638   :  { %1662 = vsyncpa [#allocation9], 1 }
 0x639   :  { %1664 = vsyncpa [#allocation9 + $0x1], 1 }
 0x63a   :  { %1665 = vsyncpa [#allocation12], 1 }
 0x63b   :  { %1667 = vsyncpa [#allocation12 + $0x1], 1 }
 0x63c   :  { %1668 = vsyncpa [#allocation15], 1 }
 0x63d   :  { %1669 = vsyncpa [#allocation18], 1 }
 0x63e   :  { %1670 = vsyncpa [#allocation10], 1 }
 0x63f   :  { %1672 = vsyncpa [#allocation10 + $0x1], 1 }

</bundles_post_ra>
